<compile_context>
chip_gen: v7x
topology: tpu7x:2x2x1
jax: 0.10.0
libtpu: 0.0.40
codegen_flags: <defaults>
</compile_context>

<pallas_src>
import functools

import jax
import jax.numpy as jnp
from jax import lax
from jax.experimental import pallas as pl
from jax.experimental.pallas import tpu as pltpu

LANE = 128
SUBLANE = 8


def _round_up(x, m):
    return (x + m - 1) // m * m


def _pick_row_tile(h, target=8):
    for th in range(min(h, target), 0, -1):
        if h % th == 0:
            return th
    return h


def _vmem_limit_bytes():
    """~3/4 of physical VMEM: ~96 MiB on v5e/v6e, ~48 MiB on v7x."""
    cap = 64 * 1024 * 1024          # conservative fallback (v7x per-core VMEM)
    try:
        info = pltpu.get_tpu_info()
        cap = int(getattr(info, "vmem_capacity_bytes", cap))
    except Exception:
        pass
    return min(96 * 1024 * 1024, (3 * cap) // 4)


def _bottleneck_kernel(x_ref, w1_ref, s1_ref, b1_ref,
                       w2_ref, s2_ref, b2_ref,
                       w3_ref, s3_ref, b3_ref,
                       out_ref,
                       *, H, W, Wp, Cp, Pp, TH, d):
    # x_ref holds one whole image, H-padded by d zero rows top+bottom, bf16.
    t = pl.program_id(1)
    r0 = pl.multiple_of(t * TH, TH)
    THh = TH + 2 * d                                     # halo window rows

    # ---- conv1 (1x1) + bn1 + relu on the TH+2d halo window -----------------
    x_win = x_ref[:, pl.ds(r0, THh), :, :]               # (1,THh,Wp,Cp) bf16
    t1 = jnp.dot(x_win.reshape(THh * Wp, Cp), w1_ref[...],
                 preferred_element_type=jnp.float32)
    t1 = jnp.maximum(t1 * s1_ref[...] + b1_ref[...], 0.0)
    t1 = t1.reshape(THh, Wp, Pp)
    # conv2 zero-pads *t1* (not x): zero the halo rows falling outside image.
    row = lax.broadcasted_iota(jnp.int32, (THh, 1, 1), 0) + (r0 - d)
    t1 = jnp.where(jnp.logical_and(row >= 0, row < H), t1, 0.0)

    # ---- fuse the 3 kw taps along the lane axis (XLU roll + VPU mask) ------
    col = lax.broadcasted_iota(jnp.int32, (1, Wp, 1), 1)

    def wtap(ow):
        shifted = pltpu.roll(t1, shift=(-ow) % Wp, axis=1) if ow else t1
        valid = jnp.logical_and(col + ow >= 0, col + ow < W)
        return jnp.where(valid, shifted, 0.0).astype(jnp.bfloat16)

    win_cat = jnp.concatenate([wtap(-d), wtap(0), wtap(d)],
                              axis=-1)                    # (THh, Wp, 3*Pp) bf16

    # ---- fuse the 3 kh taps: one K = 9*Pp MXU matmul (conv2 + bn2 + relu) --
    a = jnp.concatenate(
        [win_cat[0:TH], win_cat[d:d + TH], win_cat[2 * d:2 * d + TH]],
        axis=-1).reshape(TH * Wp, 9 * Pp)                 # (TH*Wp, 9*Pp) bf16
    t2 = jnp.dot(a, w2_ref[...], preferred_element_type=jnp.float32)
    t2 = jnp.maximum(t2 * s2_ref[...] + b2_ref[...], 0.0).astype(jnp.bfloat16)

    # ---- conv3 (1x1) + bn3 + identity residual + relu (epilogue in f32) ----
    t3 = jnp.dot(t2, w3_ref[...], preferred_element_type=jnp.float32)
    t3 = t3 * s3_ref[...] + b3_ref[...]
    x_res = x_ref[:, pl.ds(r0 + d, TH), :, :].reshape(TH * Wp, Cp)
    out = jnp.maximum(t3 + x_res.astype(jnp.float32), 0.0)
    out_ref[0] = out.reshape(TH, Wp, Cp).astype(out_ref.dtype)


def bottleneck_forward_nhwc(x_nhwc, params, *, dilation=1, row_tile=None,
                            out_dtype=jnp.bfloat16):
    """Fused Bottleneck forward on NHWC activations (preferred entry point)."""
    N, H, W, Cin = x_nhwc.shape
    P = params["w1"].shape[1]
    Cout = 4 * P
    assert Cin == Cout, "identity residual requires inplanes == planes * 4"
    d = int(dilation)
    assert 1 <= d < W

    TH = row_tile if row_tile is not None else _pick_row_tile(H)
    assert H % TH == 0, "row_tile must divide H"

    Cp = _round_up(Cin, LANE)       # lane-padded in/out channels
    Pp = _round_up(P, LANE)         # lane-padded bottleneck width
    Wp = _round_up(W, SUBLANE)      # sublane-aligned internal width
    Hp = H + 2 * d                  # d zero halo rows top + bottom

    # x: bf16 in HBM, lane-padded channels, sublane-padded W, H halo rows.
    x = jnp.pad(x_nhwc.astype(jnp.bfloat16),
                ((0, 0), (d, d), (0, Wp - W), (0, Cp - Cin)))

    # Weights: bf16 MXU operands; conv2 flattened to (kh*kw*cin, cout) so the
    # whole 3x3 is one K = 9*Pp contraction.  BN scale/bias stay f32.
    w1 = jnp.pad(params["w1"], ((0, Cp - Cin), (0, Pp - P))).astype(jnp.bfloat16)
    w2 = jnp.pad(params["w2"],
                 ((0, 0), (0, 0), (0, Pp - P), (0, Pp - P))).astype(jnp.bfloat16)
    w2 = w2.reshape(9 * Pp, Pp)                       # (kh, kw, cin) fused in K
    w3 = jnp.pad(params["w3"], ((0, Pp - P), (0, Cp - Cout))).astype(jnp.bfloat16)
    s1 = jnp.pad(params["s1"], ((0, 0), (0, Pp - P)))
    b1 = jnp.pad(params["b1"], ((0, 0), (0, Pp - P)))
    s2 = jnp.pad(params["s2"], ((0, 0), (0, Pp - P)))
    b2 = jnp.pad(params["b2"], ((0, 0), (0, Pp - P)))
    s3 = jnp.pad(params["s3"], ((0, 0), (0, Cp - Cout)))
    b3 = jnp.pad(params["b3"], ((0, 0), (0, Cp - Cout)))

    kernel = functools.partial(_bottleneck_kernel,
                               H=H, W=W, Wp=Wp, Cp=Cp, Pp=Pp, TH=TH, d=d)

    def rep(shape):
        nd = len(shape)
        return pl.BlockSpec(shape, lambda n, t: (0,) * nd)

    out = pl.pallas_call(
        kernel,
        out_shape=jax.ShapeDtypeStruct((N, H, Wp, Cp), out_dtype),
        grid=(N, H // TH),
        in_specs=[
            # x stays resident in VMEM across the row-tile axis of one image.
            # TODO(synk): for very large dilated images on v7x, tile x along H
            #             (halo window BlockSpec) instead of whole-image residency.
            pl.BlockSpec((1, Hp, Wp, Cp), lambda n, t: (n, 0, 0, 0)),
            rep(w1.shape), rep(s1.shape), rep(b1.shape),
            rep(w2.shape), rep(s2.shape), rep(b2.shape),
            rep(w3.shape), rep(s3.shape), rep(b3.shape),
        ],
        out_specs=pl.BlockSpec((1, TH, Wp, Cp), lambda n, t: (n, t, 0, 0)),
        compiler_params=pltpu.CompilerParams(
            # No cross-tile carried state anymore -> both axes parallel
            # (feeds both v7x TensorCores even when N == 1).
            dimension_semantics=("parallel", "parallel"),
            vmem_limit_bytes=_vmem_limit_bytes()),
    )(x, w1, s1, b1, w2, s2, b2, w3, s3, b3)

    # For standard ResNet channel counts (multiples of 128) and W % 8 == 0,
    # this slice is a no-op and no extra HBM pass occurs.
    if Wp != W or Cp != Cout:
        out = out[:, :, :W, :Cout]
    return out


def bottleneck_forward(x_nchw, params, *, dilation=1, row_tile=None,
                       out_dtype=jnp.bfloat16):
    # TODO(synk): the NCHW<->NHWC transposes are interface glue for the
    #             PyTorch layout; production callers should feed NHWC directly
    #             via bottleneck_forward_nhwc to avoid two extra HBM passes.
    x = jnp.transpose(x_nchw, (0, 2, 3, 1))
    out = bottleneck_forward_nhwc(x, params, dilation=dilation,
                                  row_tile=row_tile, out_dtype=out_dtype)
    return jnp.transpose(out, (0, 3, 1, 2))


def init_params(key, inplanes, planes, eps=1e-5):
    """Deterministic synthetic params. BN folded to scale/bias (eval mode)."""
    cout = planes * 4
    keys = jax.random.split(key, 15)

    # PyTorch conv weight layouts, then reshaped to kernel-friendly layouts.
    w1_t = 0.1 * jax.random.normal(keys[0], (planes, inplanes, 1, 1), jnp.float32)
    w2_t = 0.1 * jax.random.normal(keys[1], (planes, planes, 3, 3), jnp.float32)
    w3_t = 0.1 * jax.random.normal(keys[2], (cout, planes, 1, 1), jnp.float32)

    def fold_bn(kg, kb, km, kv, c):
        gamma = 1.0 + 0.1 * jax.random.normal(kg, (c,), jnp.float32)
        beta = 0.1 * jax.random.normal(kb, (c,), jnp.float32)
        mean = 0.1 * jax.random.normal(km, (c,), jnp.float32)
        var = jnp.abs(jax.random.normal(kv, (c,), jnp.float32)) + 0.5
        scale = gamma / jnp.sqrt(var + eps)
        bias = beta - mean * scale
        return scale.reshape(1, c), bias.reshape(1, c)

    s1, b1 = fold_bn(keys[3], keys[4], keys[5], keys[6], planes)
    s2, b2 = fold_bn(keys[7], keys[8], keys[9], keys[10], planes)
    s3, b3 = fold_bn(keys[11], keys[12], keys[13], keys[14], cout)

    return {
        "w1": jnp.transpose(w1_t[:, :, 0, 0], (1, 0)),        # (Cin, P)
        "w2": jnp.transpose(w2_t, (2, 3, 1, 0)),              # (3, 3, P, P) HWIO
        "w3": jnp.transpose(w3_t[:, :, 0, 0], (1, 0)),        # (P, 4P)
        "s1": s1, "b1": b1, "s2": s2, "b2": b2, "s3": s3, "b3": b3,
    }


def reference(x_nchw, params, dilation=1, out_dtype=jnp.bfloat16):
    """Pure-JAX reference emulating the kernel's mixed-precision policy:
    x stored as bf16 (conv1 operand AND residual), matmul/conv operands bf16,
    accumulation + BN/ReLU/residual in f32, output rounded to out_dtype."""
    q = lambda a: a.astype(jnp.bfloat16).astype(jnp.float32)
    x = jnp.transpose(x_nchw, (0, 2, 3, 1)).astype(jnp.float32)
    xq = q(x)
    t = jnp.einsum('nhwc,cp->nhwp', xq, q(params["w1"]))
    t = jnp.maximum(t * params["s1"] + params["b1"], 0.0)
    t = lax.conv_general_dilated(
        q(t), q(params["w2"]), window_strides=(1, 1),
        padding=[(dilation, dilation), (dilation, dilation)],
        rhs_dilation=(dilation, dilation),
        dimension_numbers=('NHWC', 'HWIO', 'NHWC'))
    t = jnp.maximum(t * params["s2"] + params["b2"], 0.0)
    t = jnp.einsum('nhwp,pc->nhwc', q(t), q(params["w3"]))
    t = t * params["s3"] + params["b3"]
    out = jnp.maximum(t + xq, 0.0).astype(out_dtype).astype(jnp.float32)
    return jnp.transpose(out, (0, 3, 1, 2))


if __name__ == "__main__":
    key = jax.random.PRNGKey(0)
    k_x, k_p = jax.random.split(key)

    N, inplanes, H, W = 2, 16, 16, 16
    planes = 4                      # expansion 4 -> output channels = 16 = inplanes

    x = jax.random.normal(k_x, (N, inplanes, H, W), jnp.float32)
    params = init_params(k_p, inplanes, planes)

    out = bottleneck_forward(x, params, dilation=1, row_tile=8)
    out = jax.block_until_ready(out)

    ref = reference(x, params, dilation=1)
    assert out.shape == (N, inplanes, H, W)
    outf = out.astype(jnp.float32)
    err = float(jnp.max(jnp.abs(outf - ref)))
    assert jnp.allclose(outf, ref, atol=2e-2, rtol=2e-2), f"max abs err {err}"

    print("KERNEL_OK")
</pallas_src>

<mosaic_0001>
module attributes {stable_mosaic.version = 11 : i64} {
  func.func @_bottleneck_kernel(%arg0: i32, %arg1: i32, %arg2: memref<1x18x16x128xbf16, #tpu.memory_space<vmem>>, %arg3: memref<128x128xbf16, #tpu.memory_space<vmem>>, %arg4: memref<1x128xf32, #tpu.memory_space<vmem>>, %arg5: memref<1x128xf32, #tpu.memory_space<vmem>>, %arg6: memref<1152x128xbf16, #tpu.memory_space<vmem>>, %arg7: memref<1x128xf32, #tpu.memory_space<vmem>>, %arg8: memref<1x128xf32, #tpu.memory_space<vmem>>, %arg9: memref<128x128xbf16, #tpu.memory_space<vmem>>, %arg10: memref<1x128xf32, #tpu.memory_space<vmem>>, %arg11: memref<1x128xf32, #tpu.memory_space<vmem>>, %arg12: memref<1x8x16x128xbf16, #tpu.memory_space<vmem>>) attributes {dimension_semantics = [#tpu.dimension_semantics<parallel>, #tpu.dimension_semantics<parallel>], iteration_bounds = array<i64: 2, 2>, scalar_prefetch = 0 : i64, scratch_operands = 0 : i64, tpu.core_type = #tpu.core_type<tc>, window_params = [{transform_indices = @transform_0, window_bounds = array<i64: 1, 18, 16, 128>}, {pipeline_mode = #tpu.pipeline_mode<synchronous>, transform_indices = @transform_1, window_bounds = array<i64: 128, 128>}, {pipeline_mode = #tpu.pipeline_mode<synchronous>, transform_indices = @transform_2, window_bounds = array<i64: 1, 128>}, {pipeline_mode = #tpu.pipeline_mode<synchronous>, transform_indices = @transform_3, window_bounds = array<i64: 1, 128>}, {pipeline_mode = #tpu.pipeline_mode<synchronous>, transform_indices = @transform_4, window_bounds = array<i64: 1152, 128>}, {pipeline_mode = #tpu.pipeline_mode<synchronous>, transform_indices = @transform_5, window_bounds = array<i64: 1, 128>}, {pipeline_mode = #tpu.pipeline_mode<synchronous>, transform_indices = @transform_6, window_bounds = array<i64: 1, 128>}, {pipeline_mode = #tpu.pipeline_mode<synchronous>, transform_indices = @transform_7, window_bounds = array<i64: 128, 128>}, {pipeline_mode = #tpu.pipeline_mode<synchronous>, transform_indices = @transform_8, window_bounds = array<i64: 1, 128>}, {pipeline_mode = #tpu.pipeline_mode<synchronous>, transform_indices = @transform_9, window_bounds = array<i64: 1, 128>}, {transform_indices = @transform_10, window_bounds = array<i64: 1, 8, 16, 128>}]} {
    %c8_i32 = arith.constant 8 : i32
    %0 = arith.muli %arg1, %c8_i32 : i32
    %1 = tpu.assume_multiple %0, 8 : i32
    %c0 = arith.constant 0 : index
    %2 = arith.index_cast %1 : i32 to index
    %c0_0 = arith.constant 0 : index
    %c0_1 = arith.constant 0 : index
    %3 = vector.load %arg2[%c0, %2, %c0_0, %c0_1] : memref<1x18x16x128xbf16, #tpu.memory_space<vmem>>, vector<1x10x16x128xbf16>
    %4 = vector.shape_cast %3 : vector<1x10x16x128xbf16> to vector<160x128xbf16>
    %c0_2 = arith.constant 0 : index
    %c0_3 = arith.constant 0 : index
    %5 = vector.load %arg3[%c0_2, %c0_3] : memref<128x128xbf16, #tpu.memory_space<vmem>>, vector<128x128xbf16>
    %cst = arith.constant dense<0.000000e+00> : vector<160x128xf32>
    %6 = tpu.matmul %4, %5, %cst {dimension_numbers = #tpu.dot_dimension_numbers<[1], [0], [0], [1], [0, 0, 1, 1], [], []>} : vector<160x128xbf16>, vector<128x128xbf16>, vector<160x128xf32> -> vector<160x128xf32>
    %c0_4 = arith.constant 0 : index
    %c0_5 = arith.constant 0 : index
    %7 = vector.load %arg4[%c0_4, %c0_5] : memref<1x128xf32, #tpu.memory_space<vmem>>, vector<1x128xf32>
    %8 = vector.broadcast %7 : vector<1x128xf32> to vector<160x128xf32>
    %9 = arith.mulf %6, %8 : vector<160x128xf32>
    %c0_6 = arith.constant 0 : index
    %c0_7 = arith.constant 0 : index
    %10 = vector.load %arg5[%c0_6, %c0_7] : memref<1x128xf32, #tpu.memory_space<vmem>>, vector<1x128xf32>
    %11 = vector.broadcast %10 : vector<1x128xf32> to vector<160x128xf32>
    %12 = arith.addf %9, %11 : vector<160x128xf32>
    %cst_8 = arith.constant 0.000000e+00 : f32
    %13 = vector.broadcast %cst_8 : f32 to vector<160x128xf32>
    %14 = arith.maximumf %12, %13 : vector<160x128xf32>
    %15 = vector.shape_cast %14 : vector<160x128xf32> to vector<10x16x128xf32>
    %16 = tpu.iota {dimensions = array<i32: 0>} : vector<10x1x1xi32>
    %c1_i32 = arith.constant 1 : i32
    %17 = arith.subi %1, %c1_i32 : i32
    %18 = vector.broadcast %17 : i32 to vector<10x1x1xi32>
    %19 = arith.addi %16, %18 : vector<10x1x1xi32>
    %c0_i32 = arith.constant 0 : i32
    %20 = vector.broadcast %c0_i32 : i32 to vector<10x1x1xi32>
    %21 = arith.cmpi sge, %19, %20 : vector<10x1x1xi32>
    %c16_i32 = arith.constant 16 : i32
    %22 = vector.broadcast %c16_i32 : i32 to vector<10x1x1xi32>
    %23 = arith.cmpi slt, %19, %22 : vector<10x1x1xi32>
    %24 = arith.andi %21, %23 : vector<10x1x1xi1>
    %cst_9 = arith.constant 0.000000e+00 : f32
    %25 = vector.shape_cast %24 : vector<10x1x1xi1> to vector<10x1x1xi1>
    %26 = vector.broadcast %25 : vector<10x1x1xi1> to vector<10x16x128xi1>
    %27 = vector.broadcast %cst_9 : f32 to vector<10x16x128xf32>
    %28 = arith.select %26, %15, %27 : vector<10x16x128xi1>, vector<10x16x128xf32>
    %29 = tpu.iota {dimensions = array<i32: 1>} : vector<1x16x1xi32>
    %c1_i32_10 = arith.constant 1 : i32
    %30 = tpu.dynamic_rotate %28 by %c1_i32_10 dim 1 : vector<10x16x128xf32>, i32 -> vector<10x16x128xf32>
    %c-1_i32 = arith.constant -1 : i32
    %31 = vector.broadcast %c-1_i32 : i32 to vector<1x16x1xi32>
    %32 = arith.addi %29, %31 : vector<1x16x1xi32>
    %c0_i32_11 = arith.constant 0 : i32
    %33 = vector.broadcast %c0_i32_11 : i32 to vector<1x16x1xi32>
    %34 = arith.cmpi sge, %32, %33 : vector<1x16x1xi32>
    %c-1_i32_12 = arith.constant -1 : i32
    %35 = vector.broadcast %c-1_i32_12 : i32 to vector<1x16x1xi32>
    %36 = arith.addi %29, %35 : vector<1x16x1xi32>
    %c16_i32_13 = arith.constant 16 : i32
    %37 = vector.broadcast %c16_i32_13 : i32 to vector<1x16x1xi32>
    %38 = arith.cmpi slt, %36, %37 : vector<1x16x1xi32>
    %39 = arith.andi %34, %38 : vector<1x16x1xi1>
    %cst_14 = arith.constant 0.000000e+00 : f32
    %40 = vector.shape_cast %39 : vector<1x16x1xi1> to vector<1x16x1xi1>
    %41 = vector.broadcast %40 : vector<1x16x1xi1> to vector<10x16x128xi1>
    %42 = vector.broadcast %cst_14 : f32 to vector<10x16x128xf32>
    %43 = arith.select %41, %30, %42 : vector<10x16x128xi1>, vector<10x16x128xf32>
    %44 = arith.truncf %43 : vector<10x16x128xf32> to vector<10x16x128xbf16>
    %c0_i32_15 = arith.constant 0 : i32
    %45 = vector.broadcast %c0_i32_15 : i32 to vector<1x16x1xi32>
    %46 = arith.addi %29, %45 : vector<1x16x1xi32>
    %c0_i32_16 = arith.constant 0 : i32
    %47 = vector.broadcast %c0_i32_16 : i32 to vector<1x16x1xi32>
    %48 = arith.cmpi sge, %46, %47 : vector<1x16x1xi32>
    %c0_i32_17 = arith.constant 0 : i32
    %49 = vector.broadcast %c0_i32_17 : i32 to vector<1x16x1xi32>
    %50 = arith.addi %29, %49 : vector<1x16x1xi32>
    %c16_i32_18 = arith.constant 16 : i32
    %51 = vector.broadcast %c16_i32_18 : i32 to vector<1x16x1xi32>
    %52 = arith.cmpi slt, %50, %51 : vector<1x16x1xi32>
    %53 = arith.andi %48, %52 : vector<1x16x1xi1>
    %cst_19 = arith.constant 0.000000e+00 : f32
    %54 = vector.shape_cast %53 : vector<1x16x1xi1> to vector<1x16x1xi1>
    %55 = vector.broadcast %54 : vector<1x16x1xi1> to vector<10x16x128xi1>
    %56 = vector.broadcast %cst_19 : f32 to vector<10x16x128xf32>
    %57 = arith.select %55, %28, %56 : vector<10x16x128xi1>, vector<10x16x128xf32>
    %58 = arith.truncf %57 : vector<10x16x128xf32> to vector<10x16x128xbf16>
    %c15_i32 = arith.constant 15 : i32
    %59 = tpu.dynamic_rotate %28 by %c15_i32 dim 1 : vector<10x16x128xf32>, i32 -> vector<10x16x128xf32>
    %c1_i32_20 = arith.constant 1 : i32
    %60 = vector.broadcast %c1_i32_20 : i32 to vector<1x16x1xi32>
    %61 = arith.addi %29, %60 : vector<1x16x1xi32>
    %c0_i32_21 = arith.constant 0 : i32
    %62 = vector.broadcast %c0_i32_21 : i32 to vector<1x16x1xi32>
    %63 = arith.cmpi sge, %61, %62 : vector<1x16x1xi32>
    %c1_i32_22 = arith.constant 1 : i32
    %64 = vector.broadcast %c1_i32_22 : i32 to vector<1x16x1xi32>
    %65 = arith.addi %29, %64 : vector<1x16x1xi32>
    %c16_i32_23 = arith.constant 16 : i32
    %66 = vector.broadcast %c16_i32_23 : i32 to vector<1x16x1xi32>
    %67 = arith.cmpi slt, %65, %66 : vector<1x16x1xi32>
    %68 = arith.andi %63, %67 : vector<1x16x1xi1>
    %cst_24 = arith.constant 0.000000e+00 : f32
    %69 = vector.shape_cast %68 : vector<1x16x1xi1> to vector<1x16x1xi1>
    %70 = vector.broadcast %69 : vector<1x16x1xi1> to vector<10x16x128xi1>
    %71 = vector.broadcast %cst_24 : f32 to vector<10x16x128xf32>
    %72 = arith.select %70, %59, %71 : vector<10x16x128xi1>, vector<10x16x128xf32>
    %73 = arith.truncf %72 : vector<10x16x128xf32> to vector<10x16x128xbf16>
    %74 = tpu.concatenate %44, %58, %73 in 2 : vector<10x16x128xbf16>, vector<10x16x128xbf16>, vector<10x16x128xbf16> -> vector<10x16x384xbf16>
    %75 = vector.extract_strided_slice %74 {offsets = [0, 0, 0], sizes = [8, 16, 384], strides = [1, 1, 1]} : vector<10x16x384xbf16> to vector<8x16x384xbf16>
    %76 = vector.extract_strided_slice %74 {offsets = [1, 0, 0], sizes = [8, 16, 384], strides = [1, 1, 1]} : vector<10x16x384xbf16> to vector<8x16x384xbf16>
    %77 = vector.extract_strided_slice %74 {offsets = [2, 0, 0], sizes = [8, 16, 384], strides = [1, 1, 1]} : vector<10x16x384xbf16> to vector<8x16x384xbf16>
    %78 = tpu.concatenate %75, %76, %77 in 2 : vector<8x16x384xbf16>, vector<8x16x384xbf16>, vector<8x16x384xbf16> -> vector<8x16x1152xbf16>
    %79 = vector.shape_cast %78 : vector<8x16x1152xbf16> to vector<128x1152xbf16>
    %c0_25 = arith.constant 0 : index
    %c0_26 = arith.constant 0 : index
    %80 = vector.load %arg6[%c0_25, %c0_26] : memref<1152x128xbf16, #tpu.memory_space<vmem>>, vector<1152x128xbf16>
    %cst_27 = arith.constant dense<0.000000e+00> : vector<128x128xf32>
    %81 = tpu.matmul %79, %80, %cst_27 {dimension_numbers = #tpu.dot_dimension_numbers<[1], [0], [0], [1], [0, 0, 1, 1], [], []>} : vector<128x1152xbf16>, vector<1152x128xbf16>, vector<128x128xf32> -> vector<128x128xf32>
    %c0_28 = arith.constant 0 : index
    %c0_29 = arith.constant 0 : index
    %82 = vector.load %arg7[%c0_28, %c0_29] : memref<1x128xf32, #tpu.memory_space<vmem>>, vector<1x128xf32>
    %83 = vector.broadcast %82 : vector<1x128xf32> to vector<128x128xf32>
    %84 = arith.mulf %81, %83 : vector<128x128xf32>
    %c0_30 = arith.constant 0 : index
    %c0_31 = arith.constant 0 : index
    %85 = vector.load %arg8[%c0_30, %c0_31] : memref<1x128xf32, #tpu.memory_space<vmem>>, vector<1x128xf32>
    %86 = vector.broadcast %85 : vector<1x128xf32> to vector<128x128xf32>
    %87 = arith.addf %84, %86 : vector<128x128xf32>
    %cst_32 = arith.constant 0.000000e+00 : f32
    %88 = vector.broadcast %cst_32 : f32 to vector<128x128xf32>
    %89 = arith.maximumf %87, %88 : vector<128x128xf32>
    %90 = arith.truncf %89 : vector<128x128xf32> to vector<128x128xbf16>
    %c0_33 = arith.constant 0 : index
    %c0_34 = arith.constant 0 : index
    %91 = vector.load %arg9[%c0_33, %c0_34] : memref<128x128xbf16, #tpu.memory_space<vmem>>, vector<128x128xbf16>
    %cst_35 = arith.constant dense<0.000000e+00> : vector<128x128xf32>
    %92 = tpu.matmul %90, %91, %cst_35 {dimension_numbers = #tpu.dot_dimension_numbers<[1], [0], [0], [1], [0, 0, 1, 1], [], []>} : vector<128x128xbf16>, vector<128x128xbf16>, vector<128x128xf32> -> vector<128x128xf32>
    %c0_36 = arith.constant 0 : index
    %c0_37 = arith.constant 0 : index
    %93 = vector.load %arg10[%c0_36, %c0_37] : memref<1x128xf32, #tpu.memory_space<vmem>>, vector<1x128xf32>
    %94 = vector.broadcast %93 : vector<1x128xf32> to vector<128x128xf32>
    %95 = arith.mulf %92, %94 : vector<128x128xf32>
    %c0_38 = arith.constant 0 : index
    %c0_39 = arith.constant 0 : index
    %96 = vector.load %arg11[%c0_38, %c0_39] : memref<1x128xf32, #tpu.memory_space<vmem>>, vector<1x128xf32>
    %97 = vector.broadcast %96 : vector<1x128xf32> to vector<128x128xf32>
    %98 = arith.addf %95, %97 : vector<128x128xf32>
    %c1_i32_40 = arith.constant 1 : i32
    %99 = arith.addi %1, %c1_i32_40 : i32
    %c0_41 = arith.constant 0 : index
    %100 = arith.index_cast %99 : i32 to index
    %c0_42 = arith.constant 0 : index
    %c0_43 = arith.constant 0 : index
    %101 = vector.load %arg2[%c0_41, %100, %c0_42, %c0_43] : memref<1x18x16x128xbf16, #tpu.memory_space<vmem>>, vector<1x8x16x128xbf16>
    %102 = vector.shape_cast %101 : vector<1x8x16x128xbf16> to vector<128x128xbf16>
    %103 = arith.extf %102 : vector<128x128xbf16> to vector<128x128xf32>
    %104 = arith.addf %98, %103 : vector<128x128xf32>
    %cst_44 = arith.constant 0.000000e+00 : f32
    %105 = vector.broadcast %cst_44 : f32 to vector<128x128xf32>
    %106 = arith.maximumf %104, %105 : vector<128x128xf32>
    %107 = vector.shape_cast %106 : vector<128x128xf32> to vector<8x16x128xf32>
    %108 = arith.truncf %107 : vector<8x16x128xf32> to vector<8x16x128xbf16>
    %c0_45 = arith.constant 0 : index
    %c0_46 = arith.constant 0 : index
    %c0_47 = arith.constant 0 : index
    %c0_48 = arith.constant 0 : index
    %109 = vector.load %arg12[%c0_45, %c0_46, %c0_47, %c0_48] : memref<1x8x16x128xbf16, #tpu.memory_space<vmem>>, vector<1x8x16x128xbf16>
    %110 = vector.shape_cast %109 : vector<1x8x16x128xbf16> to vector<8x16x128xbf16>
    %111 = vector.shape_cast %108 : vector<8x16x128xbf16> to vector<1x8x16x128xbf16>
    tpu.vector_store %arg12[%c0_45, %c0_46, %c0_47, %c0_48], %111 {strides = array<i32>} : memref<1x8x16x128xbf16, #tpu.memory_space<vmem>>, vector<1x8x16x128xbf16>,
    return
  }
  func.func @transform_0(%arg0: i32, %arg1: i32) -> (i32, i32, i32, i32) {
    %c0_i32 = arith.constant 0 : i32
    %c0_i32_0 = arith.constant 0 : i32
    %c0_i32_1 = arith.constant 0 : i32
    %c0_i32_2 = arith.constant 0 : i32
    return %arg0, %c0_i32, %c0_i32_0, %c0_i32_1 : i32, i32, i32, i32
  }
  func.func @transform_1(%arg0: i32, %arg1: i32) -> (i32, i32) {
    %c0_i32 = arith.constant 0 : i32
    %c0_i32_0 = arith.constant 0 : i32
    %c0_i32_1 = arith.constant 0 : i32
    return %c0_i32, %c0_i32_0 : i32, i32
  }
  func.func @transform_2(%arg0: i32, %arg1: i32) -> (i32, i32) {
    %c0_i32 = arith.constant 0 : i32
    %c0_i32_0 = arith.constant 0 : i32
    %c0_i32_1 = arith.constant 0 : i32
    return %c0_i32, %c0_i32_0 : i32, i32
  }
  func.func @transform_3(%arg0: i32, %arg1: i32) -> (i32, i32) {
    %c0_i32 = arith.constant 0 : i32
    %c0_i32_0 = arith.constant 0 : i32
    %c0_i32_1 = arith.constant 0 : i32
    return %c0_i32, %c0_i32_0 : i32, i32
  }
  func.func @transform_4(%arg0: i32, %arg1: i32) -> (i32, i32) {
    %c0_i32 = arith.constant 0 : i32
    %c0_i32_0 = arith.constant 0 : i32
    %c0_i32_1 = arith.constant 0 : i32
    return %c0_i32, %c0_i32_0 : i32, i32
  }
  func.func @transform_5(%arg0: i32, %arg1: i32) -> (i32, i32) {
    %c0_i32 = arith.constant 0 : i32
    %c0_i32_0 = arith.constant 0 : i32
    %c0_i32_1 = arith.constant 0 : i32
    return %c0_i32, %c0_i32_0 : i32, i32
  }
  func.func @transform_6(%arg0: i32, %arg1: i32) -> (i32, i32) {
    %c0_i32 = arith.constant 0 : i32
    %c0_i32_0 = arith.constant 0 : i32
    %c0_i32_1 = arith.constant 0 : i32
    return %c0_i32, %c0_i32_0 : i32, i32
  }
  func.func @transform_7(%arg0: i32, %arg1: i32) -> (i32, i32) {
    %c0_i32 = arith.constant 0 : i32
    %c0_i32_0 = arith.constant 0 : i32
    %c0_i32_1 = arith.constant 0 : i32
    return %c0_i32, %c0_i32_0 : i32, i32
  }
  func.func @transform_8(%arg0: i32, %arg1: i32) -> (i32, i32) {
    %c0_i32 = arith.constant 0 : i32
    %c0_i32_0 = arith.constant 0 : i32
    %c0_i32_1 = arith.constant 0 : i32
    return %c0_i32, %c0_i32_0 : i32, i32
  }
  func.func @transform_9(%arg0: i32, %arg1: i32) -> (i32, i32) {
    %c0_i32 = arith.constant 0 : i32
    %c0_i32_0 = arith.constant 0 : i32
    %c0_i32_1 = arith.constant 0 : i32
    return %c0_i32, %c0_i32_0 : i32, i32
  }
  func.func @transform_10(%arg0: i32, %arg1: i32) -> (i32, i32, i32, i32) {
    %c0_i32 = arith.constant 0 : i32
    %c0_i32_0 = arith.constant 0 : i32
    %c0_i32_1 = arith.constant 0 : i32
    return %arg0, %arg1, %c0_i32, %c0_i32_0 : i32, i32, i32, i32
  }
}

</mosaic_0001>

<bundles_post_ra>
// kernel: tpu_custom_call.1
= control target key start
LH: loop header
LB: loop body
LE: loop exit
PB: predicated region body
PF: predicated region fallthrough
CT: control target
= control target key end

     0   :  { %s5426_s0 = inlined_call_operand.hbm [shape: bf16[2,18,16,128], index: 0, kind: input, shape index: {}]   ;;  %s5427_s1 = inlined_call_operand.hbm [shape: bf16[128,128], index: 1, kind: input, shape index: {}]   ;;  %s5428_s2 = inlined_call_operand.vmem [shape: f32[1,128], index: 2, kind: input, shape index: {}]   ;;  %s5429_s3 = inlined_call_operand.vmem [shape: f32[1,128], index: 3, kind: input, shape index: {}]   ;;  %s5430_s4 = inlined_call_operand.hbm [shape: bf16[1152,128], index: 4, kind: input, shape index: {}]   ;;  %s5431_s5 = inlined_call_operand.vmem [shape: f32[1,128], index: 5, kind: input, shape index: {}]   ;;  %s5432_s6 = inlined_call_operand.vmem [shape: f32[1,128], index: 6, kind: input, shape index: {}]   ;;  %s5433_s7 = inlined_call_operand.hbm [shape: bf16[128,128], index: 7, kind: input, shape index: {}]   ;;  %s5434_s8 = inlined_call_operand.vmem [shape: f32[1,128], index: 8, kind: input, shape index: {}]   ;;  %s5435_s9 = inlined_call_operand.vmem [shape: f32[1,128], index: 9, kind: input, shape index: {}]   ;;  %s5436_s10 = inlined_call_operand.hbm [shape: bf16[2,16,16,128], index: 10, kind: output, shape index: {}]  }
   0x1   :  { %5452 = sst [smem:[#allocation20_spill]] %s5427_s1 }
   0x2   :  { %5453 = sst [smem:[#allocation21_spill]] %s5429_s3 }
   0x3   :  { %5454 = sst [smem:[#allocation22_spill]] %s5430_s4 }
   0x4   :  { %5455 = sst [smem:[#allocation23_spill]] %s5431_s5 }
   0x5   :  { %5456 = sst [smem:[#allocation24_spill]] %s5432_s6 }
   0x6   :  { %5457 = sst [smem:[#allocation25_spill]] %s5434_s8 }
   0x7   :  { %5458 = sst [smem:[#allocation26_spill]] %s5435_s9 }
   0x8   :  { %5459 = sst [smem:[#allocation27_spill]] %s5436_s10 }
   0x9   :  { %15 = vsyncpa [#allocation3], 0 }
   0xa   :  { %17 = vsyncpa [#allocation3 + $0x1], 0 }
   0xb   :  { %18 = vsyncpa [#allocation6], 0 }
   0xc   :  { %19 = vsyncpa [#allocation9], 0 }
   0xd   :  { %20 = vsyncpa [#allocation4], 0 }
   0xe   :  { %22 = vsyncpa [#allocation4 + $0x1], 0  ;;  %s4145_s13 = smov 0   ;;  %s4147_s14 = smov 0  }
   0xf   :  { %s4149_s15 = smov 0   ;;  %s4151_s16 = smov 0  }
  0x10   :  { %s4153_s17 = smov 0   ;;  %s4155_s18 = smov 0  }
  0x11   :  { %s4157_s19 = smov 0   ;;  %s4159_s20 = smov 0  }
  0x12   :  { %s4161_s21 = smov 0   ;;  %s4163_s22 = smov 0  }
  0x13   :  { %s4165_s23 = smov 0  }
  0x14 LB: > { %5460 = sst [smem:[#allocation15_spill]] %s4038_s13  ;;  %s2688_s24 = sadd.s32 4294967295, %s4078_s23   ;;  %s4078_s23 = sphi %s4165_s23, %s28_s23   ;;  %s4074_s22 = sphi %s4163_s22, %s5545_s22   ;;  %s4070_s21 = sphi %s4161_s21, %s5544_s21   ;;  %s4066_s20 = sphi %s4159_s20, %s5543_s20   ;;  %s4062_s19 = sphi %s4157_s19, %s5542_s19   ;;  %s4058_s18 = sphi %s4155_s18, %s5541_s18   ;;  %s4054_s17 = sphi %s4153_s17, %s5540_s17   ;;  %s4050_s16 = sphi %s4151_s16, %s5539_s16   ;;  %s4046_s15 = sphi %s4149_s15, %s5538_s15   ;;  %s4042_s14 = sphi %s4147_s14, %s5537_s14   ;;  %s4038_s13 = sphi %s4145_s13, %s5535_s13  }
  0x15   : > { %5461 = sst [smem:[#allocation16_spill]] %s4042_s14  ;;  %s2689_s25 = sadd.s32 4294967294, %s4078_s23  }
  0x16   : > { %5462 = sst [smem:[#allocation17_spill]] %s4066_s20  ;;  %p60_p0 = scmp.ne.s32.totalorder %s4054_s17, %s4050_s16 }
  0x17   : > { %p4201_p1 = scmp.eq.s32.totalorder %s2688_s24, 0  ;;  %p274_p2 = scmp.ne.s32.totalorder %s4046_s15, %s4042_s14 }
  0x18   : > { %p275_p4 = scmp.eq.s32.totalorder %s2688_s24, 3  ;;  %p280_p5 = scmp.ne.s32.totalorder %s4042_s14, %s4038_s13 }
  0x19   : > { %s5463_s26 = scalar_select %p4201_p1, 1, 0 }
  0x1a   : > { %p4210_p3 = por %p4201_p1, %p60_p0  ;;  %p281_p6 = scmp.eq.s32.totalorder %s2689_s25, 3 }
  0x1b   : > { %p4216_p7 = por %p275_p4, %p274_p2  ;;  %p2690_p8 = scmp.ge.s32.totalorder %s4078_s23, 1 }
  0x1c   : > { %s5464_s28 = scalar_select %p4210_p3, 1, 0 }
  0x1d   : > { %s5465_s29 = scalar_select %p4216_p7, 1, 0 }
  0x1e   : > { %p4221_p9 = por %p281_p6, %p280_p5  ;;  %p288_p10 = scmp.lt.s32.totalorder %s4078_s23, 5 }
  0x1f   : > { %5466 = sst [smem:[#allocation18_spill]] %s5465_s29  ;;  %s4080_s12 = smov [#allocation5]  }
  0x20   : > { %s5467_s30 = scalar_select %p4221_p9, 1, 0 }
  0x21   : > { %p4226_p11 = pnand %p2690_p8, %p288_p10  ;;  %s300_s16 = sshll.u32 %s4080_s12, 4  ;;  %s4230_s16 = int_to_ptr.vmem [resolvable:$true] %s300_s16 }
  0x22   : > { %5468 = sst [smem:[#allocation19_spill]] %s5467_s30  ;;  %s4081_s25 = smov [#allocation7]  }
  0x23   : > { %s5469_s11 = scalar_select %p4226_p11, 1, 0 }
  0x24   : > { %p3614_p12 = pneg %p4226_p11  ;;  %s319_s27 = sshll.u32 %s4081_s25, 4  ;;  %s4240_s27 = int_to_ptr.vmem [resolvable:$true] %s319_s27 }
  0x25   : > { %s4082_s30 = smov [#allocation8]   ;;  %s5471_s1 = sld [smem:[#allocation20_spill]] }
  0x26   : > { %p4236_p13 = pnand %p3614_p12, %p4201_p1  ;;  %s4242_s13 = sshll.u32 %s4082_s30, 4  ;;  %s339_s13 = int_to_ptr.vmem [resolvable:$true] %s4242_s13 }
  0x28   : > { %p4252_p2 = pneg %p4236_p13 }
  0x2b   : > { %s3834_s12 = scalar_lea.hbm %s5471_s1, 1024 }
  0x2c   : > { %p3835_p0 = scmp.ne.s32.totalorder %s5471_s1, %s3834_s12  ;;  %p3841_p6 = scmp.lt.u32.totalorder %s3834_s12, %s5471_s1 }
  0x2e   : > { %p3837_p4 = pnand %p4252_p2, %p3835_p0 }
  0x30   : > { %p3838_p5 = pneg %p3837_p4 }
  0x32   : > { %p3843_p8 = pnand %p3841_p6, %p3838_p5 }
  0x34   : > { %3846 = shalt.err (!%p3843_p8)
}
  0x35   : > { %s3847_s9 = scalar_lea.vmem %s4230_s16, 1024  ;;  %p3855_p7 = scmp.lt.s32.totalorder %s4230_s16, %s4230_s16 }
  0x36   : > { %p3848_p10 = scmp.ne.s32.totalorder %s4230_s16, %s3847_s9  ;;  %p3856_p1 = scmp.lt.s32.totalorder %s3847_s9, %s3847_s9 }
  0x38   : > { %p3850_p12 = pnand %p3848_p10, %p4252_p2  ;;  %p3857_p0 = por %p3856_p1, %p3855_p7 }
  0x3a   : > { %p3851_p9 = pneg %p3850_p12 }
  0x3c   : > { %p3858_p4 = pnand %p3857_p0, %p3851_p9 }
  0x3e   : > { %3861 = shalt.err (!%p3858_p4)
}
  0x3f   : > { %s5449_s10 = smov 64   ;;  %s5450_s20 = smov 4  }
  0x40   : > { %3617 = dma.hbm_to_vmem [thread:$0]  (!%p4236_p13), %s5471_s1, 1024, %s4230_s16, [#allocation6], %s5449_s10, %s5449_s10, %s5450_s20  }
  0x41   : > { %s5473_s4 = sld [smem:[#allocation22_spill]] }
  0x47   : > { %s3862_s9 = scalar_lea.hbm %s5473_s4, 9216 }
  0x48   : > { %p3863_p1 = scmp.ne.s32.totalorder %s5473_s4, %s3862_s9  ;;  %p3869_p5 = scmp.lt.u32.totalorder %s3862_s9, %s5473_s4 }
  0x4a   : > { %p3865_p7 = pnand %p3863_p1, %p4252_p2 }
  0x4c   : > { %p3866_p9 = pneg %p3865_p7 }
  0x4e   : > { %p3871_p6 = pnand %p3869_p5, %p3866_p9 }
  0x50   : > { %3874 = shalt.err (!%p3871_p6)
}
  0x51   : > { %s3875_s16 = scalar_lea.vmem %s4240_s27, 9216  ;;  %p3883_p0 = scmp.lt.s32.totalorder %s4240_s27, %s4240_s27 }
  0x52   : > { %p3876_p8 = scmp.ne.s32.totalorder %s4240_s27, %s3875_s16  ;;  %p3884_p4 = scmp.lt.s32.totalorder %s3875_s16, %s3875_s16 }
  0x54   : > { %p3878_p10 = pnand %p3876_p8, %p4252_p2  ;;  %p3885_p1 = por %p3884_p4, %p3883_p0 }
  0x56   : > { %p3879_p12 = pneg %p3878_p10 }
  0x58   : > { %p3886_p7 = pnand %p3885_p1, %p3879_p12 }
  0x5a   : > { %3889 = shalt.err (!%p3886_p7)
}
  0x5b   : > { %3620 = dma.hbm_to_vmem [thread:$0]  (!%p4236_p13), %s5473_s4, 9216, %s4240_s27, [#allocation6], %s5449_s10, %s5449_s10, %s5450_s20  }
  0x5c   : > { %s3890_s29 = scalar_lea.hbm %s5433_s7, 1024 }
  0x5d   : > { %p3891_p9 = scmp.ne.s32.totalorder %s5433_s7, %s3890_s29  ;;  %p3897_p8 = scmp.lt.u32.totalorder %s3890_s29, %s5433_s7 }
  0x5f   : > { %p3893_p5 = pnand %p3891_p9, %p4252_p2 }
  0x61   : > { %p3894_p6 = pneg %p3893_p5 }
  0x63   : > { %p3899_p10 = pnand %p3897_p8, %p3894_p6 }
  0x65   : > { %3902 = shalt.err (!%p3899_p10)
}
  0x66   : > { %s3903_s16 = scalar_lea.vmem %s339_s13, 1024  ;;  %p3911_p1 = scmp.lt.s32.totalorder %s339_s13, %s339_s13 }
  0x67   : > { %p3904_p12 = scmp.ne.s32.totalorder %s339_s13, %s3903_s16  ;;  %p3912_p7 = scmp.lt.s32.totalorder %s3903_s16, %s3903_s16 }
  0x69   : > { %p3906_p0 = pnand %p3904_p12, %p4252_p2  ;;  %p3913_p3 = por %p3912_p7, %p3911_p1 }
  0x6b   : > { %p3907_p4 = pneg %p3906_p0 }
  0x6d   : > { %p3914_p11 = pnand %p3913_p3, %p3907_p4 }
  0x6f   : > { %3917 = shalt.err (!%p3914_p11)
}
  0x70   : > { %3623 = dma.hbm_to_vmem [thread:$0]  (!%p4236_p13), %s5433_s7, 1024, %s339_s13, [#allocation9], %s5449_s10, %s5449_s10, %s5450_s20  }
  0x71   : > { %s37_s14 = sadd.s32 1, %s4070_s21  ;;  %s40_s24 = sadd.s32 1, %s4074_s22 }
  0x72   : > { %p38_p3 = scmp.ge.s32.totalorder %s37_s14, 2  ;;  %s47_s5 = sadd.s32 1, %s4058_s18 }
  0x73   : > { %p54_p11 = scmp.ne.s32.totalorder %s4058_s18, %s4054_s17  ;;  %p55_p2 = scmp.eq.s32.totalorder %s4078_s23, 0 }
  0x74   : > { %s5547_s14 = smov (%p38_p3, %s37_s14), 0  ;;  %s5549_s24 = smov (!%p38_p3, %s40_s24), %s4074_s22 }
  0x75   : > { %s260_s6 = ssub.s32 %s4070_s21, %s5547_s14  ;;  %p42_p9 = scmp.ge.s32.totalorder %s5549_s24, 2 }
  0x76   : > { %p3635_p5 = scmp.lt.s32.totalorder %s4078_s23, 4  ;;  %p4336_p13 = por %p55_p2, %p54_p11 }
  0x77   : > { %s358_s8 = sand.u32 1, %s4058_s18   ;;  %s5551_s24 = smov (%p42_p9, %s5549_s24), 0 }
  0x78   : > { %s3595_s29 = smul.u32 144, %s358_s8  ;;  %s44_s12 = ssub.s32 %s4074_s22, %s5551_s24 }
  0x79   : > { %s3596_s25 = smul.u32 2304, %s4074_s22  ;;  %p45_p6 = scmp.eq.s32.totalorder %s44_s12, 0 }
  0x7a   : > { %s261_s30 = sor.u32 %s260_s6, %s44_s12  ;;  %s5475_s16 = sadd.s32 1, %s4046_s15 }
  0x7b   : > { %p262_p8 = scmp.eq.s32.totalorder %s261_s30, 0  ;;  %s4357_s20 = scalar_lea.hbm %s5426_s0, %s3596_s25 }
  0x7c   : > { %s4347_s9 = scalar_select %p45_p6, %s4058_s18, %s47_s5  }
  0x7d   : > { %s4352_s27 = scalar_select %p262_p8, %s4046_s15, %s5475_s16  }
  0x7e   : > { %s362_s1 = scalar_lea.vmem [#allocation2], %s3595_s29  ;;  %p4365_p10 = pnand %p3635_p5, %p4336_p13 }
  0x7f   : > { %s369_s4 = sshll.u32 %s362_s1, 4  ;;  %s4369_s6 = scalar_lea.sflag [#allocation3], %s358_s8  ;;  %s4359_s4 = int_to_ptr.vmem [resolvable:$true] %s369_s4 }
  0x80   : > { %s3918_s10 = scalar_lea.hbm %s4357_s20, 2304  ;;  %p3920_p0 = pneg %p4365_p10 }
  0x81   : > { %p3919_p12 = scmp.ne.s32.totalorder %s4357_s20, %s3918_s10  ;;  %s3923_s13 = scalar_lea.hbm %s5426_s0, 4608 }
  0x82   : > { %p3924_p7 = scmp.lt.u32.totalorder %s4357_s20, %s5426_s0  ;;  %p3925_p3 = scmp.lt.u32.totalorder %s3923_s13, %s3918_s10 }
  0x83   : > { %p3921_p4 = pnand %p3920_p0, %p3919_p12  ;;  %p3927_p2 = scmp.lt.u32.totalorder %s3918_s10, %s4357_s20 }
  0x84   : > { %p3926_p11 = por %p3925_p3, %p3924_p7 }
  0x85   : > { %p3922_p1 = pneg %p3921_p4 }
  0x86   : > { %p3928_p9 = por %p3927_p2, %p3926_p11 }
  0x88   : > { %p3929_p5 = pnand %p3928_p9, %p3922_p1 }
  0x8a   : > { %3932 = shalt.err (!%p3929_p5)
}
  0x8b   : > { %s3933_s8 = scalar_lea.vmem %s4359_s4, 2304  ;;  %s4085_s30 = smov [#allocation2]  }
  0x8c   : > { %p3934_p13 = scmp.ne.s32.totalorder %s4359_s4, %s3933_s8  ;;  %s3938_s16 = sshll.u32 %s4085_s30, 4  ;;  %s3939_s16 = int_to_ptr.vmem [resolvable:$false] %s3938_s16 }
  0x8d   : > { %s3940_s3 = scalar_lea.vmem %s3939_s16, 4608  ;;  %p3941_p12 = scmp.lt.s32.totalorder %s4359_s4, %s3939_s16 }
  0x8e   : > { %p3936_p6 = pnand %p3934_p13, %p3920_p0  ;;  %p3942_p4 = scmp.lt.s32.totalorder %s3940_s3, %s3933_s8 }
  0x90   : > { %p3937_p8 = pneg %p3936_p6  ;;  %p3943_p7 = por %p3942_p4, %p3941_p12 }
  0x92   : > { %p3944_p3 = pnand %p3943_p7, %p3937_p8 }
  0x94   : > { %3947 = shalt.err (!%p3944_p3)
}
  0x95   : > { %s5477_s10 = smov 4   ;;  %s5478_s1 = smov 64  }
  0x96   : > { %3627 = dma.hbm_to_vmem [thread:$0]  (!%p4365_p10), %s4357_s20, 2304, %s4359_s4, %s4369_s6, %s5478_s1, %s5478_s1, %s5477_s10  }
  0x97   : > { %p5479_p0 = scmp.ne.s32.totalorder %s5469_s11, 0 }
  0x98   : > { %s383_s29 = sand.u32 (!%p5479_p0), 1, %s4054_s17   ;;  %p5480_p1 = scmp.ne.s32.totalorder (!%p5479_p0), %s5464_s28, 0 }
  0x99   : > { %381 = sbr.rel (%p5479_p0) target bundleno = 1050 (0x41a), region = 60  ;;  %s384_s12 = scalar_lea.sflag (!%p5479_p0), [#allocation3], %s383_s29 }
  0x9a   : > { %s3597_s13 = smul.u32 (!%p5479_p0), 144, %s383_s29 }
  0x9c   : > { %s387_s25 = scalar_lea.vmem (!%p5479_p0), [#allocation2], %s3597_s13 }
  0xa0   : > { %4021 = dma.done.wait (%p5480_p1), %s384_s12, 2304  }
  0xa1   : > { %4023 = vsyncadd (%p5480_p1), %s384_s12, 4294964992  ;;  %p5481_p11 = scmp.ne.s32.totalorder %s5463_s26, 0 }
  0xa3   : > { %4025 = dma.done.wait (%p5481_p11), [#allocation6], 10240  }
  0xa4   : > { %4027 = vsyncadd (%p5481_p11), [#allocation6], 4294957056 }
  0xa5   : > { %4029 = dma.done.wait (%p5481_p11), [#allocation9], 1024  }
  0xa6   : > { %4031 = vsyncadd (%p5481_p11), [#allocation9], 4294966272  ;;  %v3736_v0 = vld [vmem:[#allocation5] sm:$0xff]   ;;  %v3737_v1 = vld [vmem:[#allocation5 + $0x8] sm:$0xff]   ;;  %s3067_s4 = sshll.u32 %s4062_s19, 6  ;;  %s2701_s26 = sshll.u32 %s4062_s19, 3  ;;  %v854_v52 = vlaneseq }
  0xa7   : > { %3479 = vmatprep.subr.bf16.mxu0 %v3736_v0  ;;  %v3738_v2 = vld [vmem:[#allocation5 + $0x10] sm:$0xff]   ;;  %s4416_s28 = scalar_lea.vmem %s387_s25, %s3067_s4 [#allocation2]  ;;  %v3739_v3 = vld [vmem:[#allocation5 + $0x18] sm:$0xff]   ;;  %v3740_v5 = vld [vmem:[#allocation5 + $0x20] sm:$0xff]   ;;  %s2724_s11 = sadd.s32 4294967295, %s2701_s26 }
  0xa8   : > { %3480 = vmatpush3.bf16.msra.mxu0 %v3736_v0  ;;  %v3744_v4 = vld [vmem:[%s4416_s28] sm:$0xff]   ;;  %v3741_v6 = vld [vmem:[#allocation5 + $0x28] sm:$0xff]   ;;  %v3742_v9 = vld [vmem:[#allocation5 + $0x30] sm:$0xff]   ;;  %v774_v53 = vstv %s2724_s11  ;;  %v4429_v54 = vshrl.u32 %v854_v52, 7  ;;  %s5482_s30 = sld [smem:[#allocation21_spill]]  ;;  %s5523_s10 = sld [smem:[#allocation23_spill]] }
  0xa9   : > { %3481 = vmatprep.subr.bf16.mxu0 %v3737_v1  ;;  %3495 = vmatprep.mubr.bf16.mxu0 %v3744_v4  ;;  %v3754_v7 = vld [vmem:[#allocation7 + $0x40] sm:$0xff]   ;;  %v3758_v10 = vld [vmem:[#allocation7 + $0x48] sm:$0xff]   ;;  %v3743_v12 = vld [vmem:[#allocation5 + $0x38] sm:$0xff]   ;;  %v775_v55 = vadd.s32 1, %v774_v53  ;;  %v4437_v58 = vadd.s32 3, %v774_v53  ;;  %v4447_v62 = vadd.s32 2, %v774_v53 }
  0xaa   : > { %v3755_v8 = vld [vmem:[#allocation7] sm:$0xff]   ;;  %3191 = vmatprep.subr.bf16.mxu1 %v3754_v7  ;;  %v3759_v11 = vld [vmem:[#allocation7 + $0x8] sm:$0xff]   ;;  %v3762_v13 = vld [vmem:[#allocation7 + $0x50] sm:$0xff]   ;;  %v856_v56 = vadd.s32 8, %v4429_v54  ;;  %v4440_v59 = vadd.s32 4294967295, %v4429_v54  ;;  %vm784_vm2 = vcmp.ge.s32.totalorder %v774_v53, 0 }
  0xab   : > { %3192 = vmatpush3.bf16.msra.mxu1 %v3755_v8  ;;  %v3763_v14 = vld [vmem:[#allocation7 + $0x10] sm:$0xff]   ;;  %v3745_v15 = vld [vmem:[%s4416_s28 + $0x8] sm:$0xff]   ;;  %v3756_v16 = vld [vmem:[#allocation7 + $0xc0] sm:$0xff]   ;;  %vm785_vm0 = vcmp.ge.s32.totalorder %v775_v55, 0  ;;  %vm795_vm1 = vcmp.lt.s32.totalorder %v775_v55, 16  ;;  %vm787_vm3 = vcmp.ge.s32.totalorder %v4437_v58, 0 }
  0xac   : > { %3482 = vmatpush3.bf16.msra.mxu0 %v3737_v1  ;;  %3193 = vmatprep.subr.bf16.mxu1 %v3758_v10  ;;  %v3746_v17 = vld [vmem:[%s4416_s28 + $0x10] sm:$0xff]   ;;  %v3757_v18 = vld [vmem:[#allocation7 + $0x80] sm:$0xff]   ;;  %v3766_v19 = vld [vmem:[#allocation7 + $0x58] sm:$0xff]   ;;  %v4450_v1 = vadd.s32 1, %v856_v56  ;;  %vm794_vm4 = vcmp.lt.s32.totalorder %v774_v53, 16  ;;  %vm877_vm5 = vcmp.lt.s32.totalorder %v4429_v54, 1 }
  0xad   : > { %3483 = vmatprep.subr.bf16.mxu0 %v3738_v2  ;;  %v3767_v20 = vld [vmem:[#allocation7 + $0x18] sm:$0xff]   ;;  %v3760_v21 = vld [vmem:[#allocation7 + $0xc8] sm:$0xff]   ;;  %v3764_v23 = vld [vmem:[#allocation7 + $0xd0] sm:$0xff]   ;;  %vm797_vm6 = vcmp.lt.s32.totalorder %v4437_v58, 16  ;;  %vm900_vm7 = vcmp.ge.s32.totalorder %v4440_v59, 0  ;;  %vm1000_vm8 = vcmp.lt.s32.totalorder %v4429_v54, 7 }
  0xae   : > { %v3761_v22 = vld [vmem:[#allocation7 + $0x88] sm:$0xff]   ;;  %v3770_v24 = vld [vmem:[#allocation7 + $0x60] sm:$0xff]   ;;  %v3747_v25 = vld [vmem:[%s4416_s28 + $0x18] sm:$0xff]   ;;  %vm786_vm10 = vcmp.ge.s32.totalorder %v4447_v62, 0  ;;  %vm796_vm11 = vcmp.lt.s32.totalorder %v4447_v62, 16  ;;  %vm1026_vm13 = vcmp.lt.s32.totalorder %v4450_v1, 16 }
  0xaf   : > { %3194 = vmatpush3.bf16.msra.mxu1 %v3759_v11  ;;  %v3748_v26 = vld [vmem:[%s4416_s28 + $0x20] sm:$0xff]   ;;  %v3765_v27 = vld [vmem:[#allocation7 + $0x90] sm:$0xff]   ;;  %v3768_v28 = vld [vmem:[#allocation7 + $0xd8] sm:$0xff]   ;;  %s5524_s13 = sld [smem:[#allocation24_spill]]  ;;  %s5525_s4 = sld [smem:[#allocation25_spill]] }
  0xb0   : > { %3484 = vmatpush3.bf16.msra.mxu0 %v3738_v2  ;;  %3195 = vmatprep.subr.bf16.mxu1 %v3762_v13  ;;  %v3769_v29 = vld [vmem:[#allocation7 + $0x98] sm:$0xff]   ;;  %v3749_v30 = vld [vmem:[%s4416_s28 + $0x28] sm:$0xff]   ;;  %v3750_v31 = vld [vmem:[%s4416_s28 + $0x30] sm:$0xff]   ;;  %v4478_v13 = vadd.s32 5, %v774_v53  ;;  %s5526_s26 = sld [smem:[#allocation16_spill]]  ;;  %s5527_s5 = sld [smem:[#allocation26_spill]] }
  0xb1   : > { %3485 = vmatprep.subr.bf16.mxu0 %v3739_v3  ;;  %v3751_v32 = vld [vmem:[%s4416_s28 + $0x38] sm:$0xff]   ;;  %v3752_v33 = vld [vmem:[%s4416_s28 + $0x40] sm:$0xff]   ;;  %v3753_v34 = vld [vmem:[%s4416_s28 + $0x48] sm:$0xff]   ;;  %s5528_s16 = sld [smem:[#allocation17_spill]]  ;;  %s3085_s3 = sshll.u32 %s4062_s19, 4 }
  0xb2   : > { %v3772_v35 = vld [vmem:[#allocation7 + $0xe0] sm:$0xff]   ;;  %v3774_v38 = vld [vmem:[#allocation7 + $0x68] sm:$0xff]   ;;  %v3778_v42 = vld [vmem:[#allocation7 + $0x70] sm:$0xff]   ;;  %s5530_s25 = sld [smem:[#allocation27_spill]] }
  0xb3   : > { %3196 = vmatpush3.bf16.msra.mxu1 %v3763_v14  ;;  %v3771_v36 = vld [vmem:[#allocation7 + $0x20] sm:$0xff]   ;;  %v3776_v39 = vld [vmem:[#allocation7 + $0xe8] sm:$0xff]   ;;  %v3780_v43 = vld [vmem:[#allocation7 + $0xf0] sm:$0xff]  }
  0xb4   : > { %3486 = vmatpush3.bf16.msra.mxu0 %v3739_v3  ;;  %3197 = vmatprep.subr.bf16.mxu1 %v3766_v19  ;;  %v3773_v37 = vld [vmem:[#allocation7 + $0xa0] sm:$0xff]   ;;  %v3775_v40 = vld [vmem:[#allocation7 + $0x28] sm:$0xff]   ;;  %v3779_v44 = vld [vmem:[#allocation7 + $0x30] sm:$0xff]  }
  0xb5   : > { %3487 = vmatprep.subr.bf16.mxu0 %v3740_v5  ;;  %v3777_v41 = vld [vmem:[#allocation7 + $0xa8] sm:$0xff]   ;;  %v3781_v45 = vld [vmem:[#allocation7 + $0xb0] sm:$0xff]   ;;  %v3782_v46 = vld [vmem:[#allocation7 + $0x78] sm:$0xff]  }
  0xb6   : > { %v3783_v47 = vld [vmem:[#allocation7 + $0x38] sm:$0xff]   ;;  %v3786_v50 = vld [vmem:[#allocation7 + $0x140] sm:$0xff]   ;;  %vm4462_vm9 = vmand %vm785_vm0, %vm795_vm1  ;;  %vm799_vm0 = vcmp.lt.s32.totalorder %v4478_v13, 16  ;;  %s433_s6 = sand.u32 1, %s5526_s26  }
  0xb7   : > { %3198 = vmatpush3.bf16.msra.mxu1 %v3767_v20  ;;  %v3784_v48 = vld [vmem:[#allocation7 + $0xf8] sm:$0xff]   ;;  %v3794_v51 = vld [vmem:[#allocation7 + $0x1c0] sm:$0xff]   ;;  %vm4473_vm12 = vmand %vm784_vm2, %vm794_vm4  ;;  %v4489_v20 = vadd.s32 6, %v774_v53  ;;  %s2700_s8 = sshll.u32 %s433_s6, 6  ;;  %s5365_s11 = scalar_lea.sflag [#allocation4], %s433_s6 }
  0xb8   : > { %3488 = vmatpush3.bf16.msra.mxu0 %v3740_v5  ;;  %3199 = vmatprep.subr.bf16.mxu1 %v3770_v24  ;;  %v3785_v49 = vld [vmem:[#allocation7 + $0xb8] sm:$0xff]   ;;  %v4435_v57 = vld [vmem:[%s5428_s2] ss:$0 sm:$0xff]  ;;  %vm2797_vm14 = vmpackc.low %vm4473_vm12, %vm4473_vm12 }
  0xb9   : > { %3489 = vmatprep.subr.bf16.mxu0 %v3741_v6  ;;  %v4445_v61 = vld [vmem:[%s5482_s30] ss:$0 sm:$0xff]  ;;  %vm4525_vm1 = vmand %vm787_vm3, %vm797_vm6  ;;  %vm4086_vm3 = vmmov 1   ;;  %v3821_v7 = vld [vmem:[#allocation7 + $0x218] sm:$0xff]   ;;  %s5321_s30 = scalar_lea.vmem [#allocation10], %s2700_s8 }
  0xba   : > { %vm4537_vm15 = vmand %vm786_vm10, %vm796_vm11  ;;  %v3826_v58 = vld [vmem:[#allocation8] sm:$0xff]   ;;  %s2566_s29 = sshll.u32 %s5321_s30, 4  ;;  %s5359_s29 = int_to_ptr.vmem [resolvable:$true] %s2566_s29 }
  0xbb   : > { %3200 = vmatpush3.bf16.msra.mxu1 %v3771_v36  ;;  %vm4558_vm6 = vmpackc.low %vm4086_vm3, %vm900_vm7  ;;  %vm800_vm7 = vcmp.lt.s32.totalorder %v4489_v20, 16  ;;  %s3948_s20 = scalar_lea.vmem %s5359_s29, 1024 }
  0xbc   : > { %3490 = vmatpush3.bf16.msra.mxu0 %v3741_v6  ;;  %3201 = vmatprep.subr.bf16.mxu1 %v3774_v38  ;;  %vm4568_vm10 = vmpackc.low %vm1026_vm13, %vm4086_vm3  ;;  %vm5495_vm13 = vcmp.ge.s32.totalorder %v4478_v13, 0  ;;  %vm790_vm3 = vcmp.ge.s32.totalorder %v4489_v20, 0  ;;  %v3789_v13 = vld [vmem:[#allocation7 + $0x108] sm:$0xff]   ;;  %p3949_p10 = scmp.ne.s32.totalorder %s5359_s29, %s3948_s20 }
  0xbd   : > { %3491 = vmatprep.subr.bf16.mxu0 %v3742_v9  ;;  %v3810_v20 = vld [vmem:[#allocation7 + $0x1e8] sm:$0xff]  }
  0xbf   : > { %3202 = vmatpush3.bf16.msra.mxu1 %v3775_v40 }
  0xc0   : > { %3492 = vmatpush3.bf16.msra.mxu0 %v3742_v9  ;;  %3203 = vmatprep.subr.bf16.mxu1 %v3778_v42 }
  0xc1   : > { %3493 = vmatprep.subr.bf16.mxu0 %v3743_v12 }
  0xc3   : > { %3204 = vmatpush3.bf16.msra.mxu1 %v3779_v44 }
  0xc4   : > { %3494 = vmatpush3.bf16.msra.mxu0 %v3743_v12  ;;  %3205 = vmatprep.subr.bf16.mxu1 %v3782_v46 }
  0xc5   : > { %3255 = vmatprep.subr.bf16.mxu0 %v3756_v16  ;;  %v4481_v16 = vadd.s32 4, %v774_v53 }
  0xc7   : > { %3496 = vmatmul.mubr.bf16.vlgmr.msra.gmra.mrb[0].mxu0 %v3745_v15  ;;  %3206 = vmatpush3.bf16.msra.mxu1 %v3783_v47  ;;  %vm788_vm2 = vcmp.ge.s32.totalorder %v4481_v16, 0  ;;  %vm798_vm4 = vcmp.lt.s32.totalorder %v4481_v16, 16 }
  0xc8   : > { %3499 = vmatprep.mubr.bf16.mxu0 %v3746_v17  ;;  %3256 = vmatpush3.bf16.msra.mxu0 %v3757_v18  ;;  %v4483_v17 = vadd.s32 7, %v774_v53 }
  0xc9   : > { %3257 = vmatprep.subr.bf16.mxu0 %v3760_v21  ;;  %3319 = vmatprep.subr.bf16.mxu1 %v3786_v50  ;;  %v4491_v21 = vadd.s32 9, %v774_v53 }
  0xca   : > { %vm801_vm11 = vcmp.lt.s32.totalorder %v4483_v17, 16 }
  0xcc   : > { %3258 = vmatpush3.bf16.msra.mxu0 %v3761_v22 }
  0xcd   : > { %3259 = vmatprep.subr.bf16.mxu0 %v3764_v23 }
  0xcf   : > { %3500 = vmatmul.mubr.bf16.gmra.mrb[4].mxu0 %v3747_v25 }
  0xd0   : > { %3503 = vmatprep.mubr.bf16.mxu0 %v3748_v26  ;;  %3260 = vmatpush3.bf16.msra.mxu0 %v3765_v27  ;;  %v4498_v26 = vadd.s32 8, %v774_v53 }
  0xd1   : > { %3261 = vmatprep.subr.bf16.mxu0 %v3768_v28 }
  0xd4   : > { %3262 = vmatpush3.bf16.msra.mxu0 %v3769_v29 }
  0xd5   : > { %3263 = vmatprep.subr.bf16.mxu0 %v3772_v35 }
  0xd7   : > { %3504 = vmatmul.mubr.bf16.gmra.mrb[8].mxu0 %v3749_v30 }
  0xd8   : > { %3507 = vmatprep.mubr.bf16.mxu0 %v3750_v31  ;;  %3264 = vmatpush3.bf16.msra.mxu0 %v3773_v37 }
  0xd9   : > { %3265 = vmatprep.subr.bf16.mxu0 %v3776_v39 }
  0xdc   : > { %3266 = vmatpush3.bf16.msra.mxu0 %v3777_v41 }
  0xdd   : > { %3267 = vmatprep.subr.bf16.mxu0 %v3780_v43 }
  0xdf   : > { %3508 = vmatmul.mubr.bf16.gmra.mrb[12].mxu0 %v3751_v32 }
  0xe0   : > { %3511 = vmatprep.mubr.bf16.mxu0 %v3752_v33  ;;  %3268 = vmatpush3.bf16.msra.mxu0 %v3781_v45 }
  0xe1   : > { %3269 = vmatprep.subr.bf16.mxu0 %v3784_v48 }
  0xe4   : > { %3270 = vmatpush3.bf16.msra.mxu0 %v3785_v49 }
  0xe5   : > { %3383 = vmatprep.subr.bf16.mxu0 %v3794_v51 }
  0xe7   : > { %3512 = vmatmul.mubr.bf16.gmra.mrb[16].mxu0 %v3753_v34 }
 0x19a   : > { %v3497_v60 = vpop.f32.mrb[0].mxu0 }
 0x19b   : > { %v708_v63 = vmul.f32 %v3497_v60, %v4435_v57  ;;  %v620_v0 = vpop.f32.mrb[1].mxu0 }
 0x19c   : > { %v706_v2 = vmul.f32 %v4435_v57, %v620_v0  ;;  %v3498_v3 = vpop.f32.mrb[2].mxu0 }
 0x19d   : > { %v735_v4 = vadd.f32 %v4445_v61, %v708_v63  ;;  %v709_v5 = vmul.f32 %v3498_v3, %v4435_v57  ;;  %v623_v6 = vpop.f32.mrb[3].mxu0  ;;  %v3795_v3 = vld [vmem:[#allocation7 + $0x180] sm:$0xff]  }
 0x19e   : > { %v733_v8 = vadd.f32 %v4445_v61, %v706_v2  ;;  %v707_v9 = vmul.f32 %v4435_v57, %v623_v6 }
 0x19f   : > { %v755_v10 = vmax.f32 %v735_v4, 0.0  ;;  %v736_v11 = vadd.f32 %v4445_v61, %v709_v5 }
 0x1a0   : > { %v753_v14 = vmax.f32 %v733_v8, 0.0  ;;  %v734_v15 = vadd.f32 %v4445_v61, %v707_v9  ;;  %v3798_v9 = vld [vmem:[#allocation7 + $0x1c8] sm:$0xff]  }
 0x1a1   : > { %v4487_v18 = vsel %vm4462_vm9, %v755_v10, 0.0  ;;  %v756_v19 = vmax.f32 %v736_v11, 0.0 }
 0x1a2   : > { %v858_v22 = vrot.slane %v4487_v18, 7  ;;  %v754_v23 = vmax.f32 %v734_v15, 0.0  ;;  %v3501_v24 = vpop.f32.mrb[4].mxu0  ;;  %v4496_v25 = vsel %vm4473_vm12, %v753_v14, 0.0  ;;  %v981_v27 = vrot.slane %v4487_v18, 1 }
 0x1a3   : > { %v4503_v28 = vsel %vm4462_vm9, %v756_v19, 0.0  ;;  %v4505_v29 = vpack.c.bf16 %v756_v19, %v755_v10  ;;  %v712_v30 = vmul.f32 %v3501_v24, %v4435_v57  ;;  %v636_v31 = vpop.f32.mrb[5].mxu0  ;;  %v857_v36 = vrot.slane %v4496_v25, 7 }
 0x1a4   : > { %v868_v32 = vrot.slane %v4503_v28, 7  ;;  %v710_v33 = vmul.f32 %v4435_v57, %v636_v31  ;;  %v3502_v34 = vpop.f32.mrb[6].mxu0  ;;  %v835_v35 = vsel %vm4473_vm12, %v754_v23, 0.0  ;;  %v980_v41 = vrot.slane %v4496_v25, 1  ;;  %vm5451_vm12 = vmpackc.low %vm4462_vm9, %vm4462_vm9 }
 0x1a5   : > { %v739_v37 = vadd.f32 %v4445_v61, %v712_v30  ;;  %v713_v38 = vmul.f32 %v3502_v34, %v4435_v57  ;;  %v639_v39 = vpop.f32.mrb[7].mxu0  ;;  %v867_v40 = vrot.slane %v835_v35, 7  ;;  %v990_v45 = vrot.slane %v835_v35, 1  ;;  %v3788_v35 = vld [vmem:[#allocation7 + $0x148] sm:$0xff]  }
 0x1a6   : > { %v737_v43 = vadd.f32 %v4445_v61, %v710_v33  ;;  %v711_v44 = vmul.f32 %v4435_v57, %v639_v39  ;;  %v2798_v46 = vpack.c.bf16 %v754_v23, %v753_v14  ;;  %v879_v50 = vsel %vm877_vm5, %v858_v22, %v868_v32 }
 0x1a7   : > { %v759_v47 = vmax.f32 %v739_v37, 0.0  ;;  %v740_v49 = vadd.f32 %v4445_v61, %v713_v38  ;;  %v889_v51 = vsel %vm877_vm5, %v868_v32, %v858_v22  ;;  %v1001_v55 = vsel %vm1000_vm8, %v980_v41, %v990_v45  ;;  %v3787_v32 = vld [vmem:[#allocation7 + $0x100] sm:$0xff]  }
 0x1a8   : > { %v757_v52 = vmax.f32 %v737_v43, 0.0  ;;  %v738_v53 = vadd.f32 %v4445_v61, %v711_v44  ;;  %v1011_v56 = vsel %vm1000_vm8, %v990_v45, %v980_v41  ;;  %2799 = vmatprep.mubr.msk.bf16.mxu1 %vm2797_vm14, %v2798_v46  ;;  %v4572_v2 = vpack.c.bf16 %v879_v50, %v889_v51  ;;  %v3799_v44 = vld [vmem:[#allocation7 + $0x188] sm:$0xff]   ;;  %vm4630_vm14 = vmand %vm5495_vm13, %vm799_vm0 }
 0x1a9   : > { %v4564_v60 = vsel %vm4525_vm1, %v759_v47, 0.0  ;;  %v760_v62 = vmax.f32 %v740_v49, 0.0  ;;  %v2849_v0 = vpack.c.bf16 %v1011_v56, %v1001_v55  ;;  %v991_v59 = vrot.slane %v4503_v28, 1  ;;  %v3802_v49 = vld [vmem:[#allocation7 + $0x1d0] sm:$0xff]   ;;  %vm4654_vm0 = vmand %vm788_vm2, %vm798_vm4 }
 0x1aa   : > { %v860_v4 = vrot.slane %v4564_v60, 7  ;;  %v4578_v5 = vsel %vm4537_vm15, %v757_v52, 0.0  ;;  %v758_v6 = vmax.f32 %v738_v53, 0.0  ;;  %v3505_v8 = vpop.f32.mrb[8].mxu0  ;;  %v983_v1 = vrot.slane %v4564_v60, 1  ;;  %2847 = vmatprep.mubr.msk.bf16.mxu0 %vm4558_vm6, %v4572_v2  ;;  %vm4699_vm2 = vmpackc.low %vm4537_vm15, %vm4537_vm15 }
 0x1ab   : > { %v859_v10 = vrot.slane %v4578_v5, 7  ;;  %v4584_v11 = vsel %vm4525_vm1, %v760_v62, 0.0  ;;  %v4586_v12 = vpack.c.bf16 %v760_v62, %v759_v47  ;;  %v652_v14 = vpop.f32.mrb[9].mxu0  ;;  %v982_v15 = vrot.slane %v4578_v5, 1  ;;  %2850 = vmatmul.mubr.msk.bf16.vlgmr.msra.gmra.mrb[20].mxu0 %vm4568_vm10, %v2849_v0  ;;  %v3790_v0 = vld [vmem:[#allocation7 + $0x150] sm:$0xff]   ;;  %vm4769_vm4 = vmand %vm790_vm3, %vm800_vm7 }
 0x1ac   : > { %v870_v19 = vrot.slane %v4584_v11, 7  ;;  %v839_v22 = vsel %vm4537_vm15, %v758_v6, 0.0  ;;  %v4595_v23 = vpack.c.bf16 %v758_v6, %v757_v52  ;;  %v3506_v24 = vpop.f32.mrb[10].mxu0  ;;  %v878_v30 = vsel %vm877_vm5, %v857_v36, %v867_v40  ;;  %3384 = vmatpush3.bf16.msra.mxu0 %v3795_v3  ;;  %vm4796_vm7 = vmpackc.low %vm4525_vm1, %vm4525_vm1 }
 0x1ad   : > { %v869_v25 = vrot.slane %v839_v22, 7  ;;  %v992_v28 = vrot.slane %v839_v22, 1  ;;  %v888_v31 = vsel %vm877_vm5, %v867_v40, %v857_v36  ;;  %v655_v33 = vpop.f32.mrb[11].mxu0  ;;  %v716_v37 = vmul.f32 %v3505_v8, %v4435_v57  ;;  %3385 = vmatprep.subr.bf16.mxu0 %v3798_v9 }
 0x1ae   : > { %v2801_v34 = vpack.c.bf16 %v878_v30, %v888_v31  ;;  %v714_v38 = vmul.f32 %v4435_v57, %v652_v14  ;;  %v1002_v39 = vsel %vm1000_vm8, %v981_v27, %v991_v59  ;;  %v1012_v41 = vsel %vm1000_vm8, %v991_v59, %v981_v27 }
 0x1af   : > { %v880_v36 = vsel %vm877_vm5, %v859_v10, %v869_v25  ;;  %v890_v40 = vsel %vm877_vm5, %v869_v25, %v859_v10  ;;  %v717_v43 = vmul.f32 %v3506_v24, %v4435_v57  ;;  %v743_v45 = vadd.f32 %v4445_v61, %v716_v37  ;;  %v3804_v24 = vld [vmem:[#allocation7 + $0x1d8] sm:$0xff]  }
 0x1b0   : > { %2802 = vmatmul.mubr.msk.bf16.vlgmr.msra.gmra.mrb[0].mxu1 %vm4558_vm6, %v2801_v34  ;;  %v4634_v18 = vpack.c.bf16 %v880_v36, %v890_v40  ;;  %v4637_v27 = vadd.f32 %v4445_v61, %v714_v38  ;;  %v4639_v47 = vpack.c.bf16 %v1012_v41, %v1002_v39  ;;  %v993_v50 = vrot.slane %v4584_v11, 1  ;;  %3386 = vmatpush3.bf16.msra.mxu0 %v3799_v44  ;;  %v3803_v11 = vld [vmem:[#allocation7 + $0x190] sm:$0xff]   ;;  %v3792_v39 = vld [vmem:[#allocation7 + $0x158] sm:$0xff]   ;;  %v3819_v41 = vld [vmem:[#allocation7 + $0x208] sm:$0xff]  }
 0x1b1   : > { %3320 = vmatpush3.bf16.msra.mxu1 %v3787_v32  ;;  %2805 = vmatprep.mubr.msk.bf16.mxu1 %vm5451_vm12, %v4505_v29  ;;  %v744_v52 = vadd.f32 %v4445_v61, %v717_v43  ;;  %v715_v53 = vmul.f32 %v4435_v57, %v655_v33  ;;  %v881_v55 = vsel %vm877_vm5, %v860_v4, %v870_v19  ;;  %v763_v56 = vmax.f32 %v743_v45, 0.0  ;;  %v3791_v32 = vld [vmem:[#allocation7 + $0x110] sm:$0xff]   ;;  %v3805_v45 = vld [vmem:[#allocation7 + $0x198] sm:$0xff]  }
 0x1b2   : > { %3321 = vmatprep.subr.bf16.mxu1 %v3788_v35  ;;  %2853 = vmatprep.mubr.msk.bf16.mxu0 %vm4558_vm6, %v4634_v18  ;;  %v761_v62 = vmax.f32 %v4637_v27, 0.0  ;;  %v891_v16 = vsel %vm877_vm5, %v870_v19, %v860_v4  ;;  %v1003_v3 = vsel %vm1000_vm8, %v982_v15, %v992_v28  ;;  %v3509_v59 = vpop.f32.mrb[12].mxu0  ;;  %v1013_v9 = vsel %vm1000_vm8, %v992_v28, %v982_v15 }
 0x1b3   : > { %v764_v5 = vmax.f32 %v744_v52, 0.0  ;;  %v742_v6 = vadd.f32 %v4445_v61, %v715_v53  ;;  %v4671_v8 = vpack.c.bf16 %v881_v55, %v891_v16  ;;  %v668_v10 = vpop.f32.mrb[13].mxu0  ;;  %v4677_v14 = vsel %vm4630_vm14, %v763_v56, 0.0  ;;  %2856 = vmatmul.mubr.msk.bf16.gmra.mrb[24].mxu0 %vm4568_vm10, %v4639_v47  ;;  %3387 = vmatprep.subr.bf16.mxu0 %v3802_v49  ;;  %v3808_v52 = vld [vmem:[#allocation7 + $0x1e0] sm:$0xff]   ;;  %v3793_v55 = vld [vmem:[#allocation7 + $0x118] sm:$0xff]  }
 0x1b4   : > { %v4681_v4 = vsel %vm4654_vm0, %v761_v62, 0.0  ;;  %v4686_v19 = vpack.c.bf16 %v1013_v9, %v1003_v3  ;;  %v720_v22 = vmul.f32 %v3509_v59, %v4435_v57  ;;  %v3510_v15 = vpop.f32.mrb[14].mxu0  ;;  %v862_v25 = vrot.slane %v4677_v14, 7  ;;  %3388 = vmatpush3.bf16.msra.mxu0 %v3803_v11 }
 0x1b5   : > { %v985_v28 = vrot.slane %v4677_v14, 1  ;;  %3322 = vmatpush3.bf16.msra.mxu1 %v3789_v13  ;;  %v861_v30 = vrot.slane %v4681_v4, 7  ;;  %v984_v31 = vrot.slane %v4681_v4, 1  ;;  %2859 = vmatprep.mubr.msk.bf16.mxu0 %vm4558_vm6, %v4671_v8  ;;  %v671_v33 = vpop.f32.mrb[15].mxu0  ;;  %v4705_v35 = vsel %vm4630_vm14, %v764_v5, 0.0 }
 0x1b6   : > { %v4707_v37 = vpack.c.bf16 %v764_v5, %v763_v56  ;;  %v762_v38 = vmax.f32 %v742_v6, 0.0  ;;  %3323 = vmatprep.subr.bf16.mxu1 %v3790_v0  ;;  %v4710_v36 = vadd.f32 %v4445_v61, %v720_v22  ;;  %vm803_vm13 = vcmp.lt.s32.totalorder %v4491_v21, 16  ;;  %3389 = vmatprep.subr.bf16.mxu0 %v3804_v24  ;;  %v3796_v0 = vld [vmem:[#allocation7 + $0x160] sm:$0xff]  }
 0x1b7   : > { %v872_v48 = vrot.slane %v4705_v35, 7  ;;  %v995_v40 = vrot.slane %v4705_v35, 1  ;;  %vm5502_vm15 = vcmp.ge.s32.totalorder %v4483_v17, 0  ;;  %v718_v43 = vmul.f32 %v4435_v57, %v668_v10  ;;  %v3809_v22 = vld [vmem:[#allocation7 + $0x1a0] sm:$0xff]  }
 0x1b8   : > { %vm4720_vm12 = vmand %vm5502_vm15, %vm801_vm11  ;;  %v1004_v44 = vsel %vm1000_vm8, %v983_v1, %v993_v50  ;;  %2808 = vmatmul.mubr.msk.bf16.gmra.mrb[4].mxu1 %vm4558_vm6, %v4572_v2  ;;  %v843_v17 = vsel %vm4654_vm0, %v762_v38, 0.0  ;;  %v4734_v27 = vpack.c.bf16 %v762_v38, %v761_v62  ;;  %v767_v49 = vmax.f32 %v4710_v36, 0.0  ;;  %3390 = vmatpush3.bf16.msra.mxu0 %v3805_v45  ;;  %v3830_v10 = vld [vmem:[#allocation8 + $0x20] sm:$0xff]  }
 0x1b9   : > { %v1014_v13 = vsel %vm1000_vm8, %v993_v50, %v983_v1  ;;  %2811 = vmatprep.mubr.msk.bf16.mxu1 %vm4699_vm2, %v4595_v23  ;;  %v871_v53 = vrot.slane %v843_v17, 7  ;;  %v994_v2 = vrot.slane %v843_v17, 1  ;;  %3324 = vmatpush3.bf16.msra.mxu1 %v3791_v32  ;;  %v745_v56 = vadd.f32 %v4445_v61, %v718_v43 }
 0x1ba   : > { %v4745_v62 = vpack.c.bf16 %v1014_v13, %v1004_v44  ;;  %3325 = vmatprep.subr.bf16.mxu1 %v3792_v39  ;;  %v4749_v60 = vsel %vm4720_vm12, %v767_v49, 0.0  ;;  %v721_v1 = vmul.f32 %v3510_v15, %v4435_v57  ;;  %v719_v50 = vmul.f32 %v4435_v57, %v671_v33  ;;  %v3513_v3 = vpop.f32.mrb[16].mxu0  ;;  %3391 = vmatprep.subr.bf16.mxu0 %v3808_v52  ;;  %v3797_v39 = vld [vmem:[#allocation7 + $0x120] sm:$0xff]   ;;  %v3800_v13 = vld [vmem:[#allocation7 + $0x168] sm:$0xff]  }
 0x1bb   : > { %v883_v16 = vsel %vm877_vm5, %v862_v25, %v872_v48  ;;  %vm792_vm11 = vcmp.ge.s32.totalorder %v4498_v26, 0  ;;  %vm802_vm15 = vcmp.lt.s32.totalorder %v4498_v26, 16  ;;  %v864_v59 = vrot.slane %v4749_v60, 7  ;;  %v684_v11 = vpop.f32.mrb[17].mxu0  ;;  %2862 = vmatmul.mubr.msk.bf16.gmra.mrb[28].mxu0 %vm4568_vm10, %v4686_v19 }
 0x1bc   : > { %v987_v5 = vrot.slane %v4749_v60, 1  ;;  %v882_v6 = vsel %vm877_vm5, %v861_v30, %v871_v53  ;;  %v892_v9 = vsel %vm877_vm5, %v871_v53, %v861_v30  ;;  %v765_v24 = vmax.f32 %v745_v56, 0.0  ;;  %v3514_v33 = vpop.f32.mrb[18].mxu0  ;;  %3392 = vmatpush3.bf16.msra.mxu0 %v3809_v22 }
 0x1bd   : > { %v4776_v15 = vpack.c.bf16 %v882_v6, %v892_v9  ;;  %v748_v30 = vadd.f32 %v4445_v61, %v721_v1  ;;  %v746_v32 = vadd.f32 %v4445_v61, %v719_v50  ;;  %3326 = vmatpush3.bf16.msra.mxu1 %v3793_v55  ;;  %v893_v38 = vsel %vm877_vm5, %v872_v48, %v862_v25  ;;  %v687_v45 = vpop.f32.mrb[19].mxu0  ;;  %v3811_v55 = vld [vmem:[#allocation7 + $0x1a8] sm:$0xff]  }
 0x1be   : > { %v1005_v36 = vsel %vm1000_vm8, %v984_v31, %v994_v2  ;;  %v1015_v43 = vsel %vm1000_vm8, %v994_v2, %v984_v31  ;;  %v724_v44 = vmul.f32 %v3513_v3, %v4435_v57  ;;  %v4805_v4 = vsel %vm4769_vm4, %v765_v24, 0.0  ;;  %3327 = vmatprep.subr.bf16.mxu1 %v3796_v0  ;;  %3393 = vmatprep.subr.bf16.mxu0 %v3810_v20  ;;  %v3814_v0 = vld [vmem:[#allocation7 + $0x1f0] sm:$0xff]  }
 0x1bf   : > { %2865 = vmatprep.mubr.msk.bf16.mxu0 %vm4558_vm6, %v4776_v15  ;;  %v768_v25 = vmax.f32 %v748_v30, 0.0  ;;  %v766_v31 = vmax.f32 %v746_v32, 0.0  ;;  %v4807_v48 = vpack.c.bf16 %v883_v16, %v893_v38  ;;  %v863_v42 = vrot.slane %v4805_v4, 7  ;;  %v3806_v38 = vld [vmem:[#allocation7 + $0x170] sm:$0xff]  }
 0x1c0   : > { %v986_v52 = vrot.slane %v4805_v4, 1  ;;  %v4811_v53 = vpack.c.bf16 %v1015_v43, %v1005_v36  ;;  %v4814_v2 = vadd.f32 %v4445_v61, %v724_v44  ;;  %2814 = vmatmul.mubr.msk.bf16.gmra.mrb[8].mxu1 %vm4558_vm6, %v4634_v18  ;;  %vm5509_vm1 = vcmp.ge.s32.totalorder %v4491_v21, 0  ;;  %3394 = vmatpush3.bf16.msra.mxu0 %v3811_v55  ;;  %v3815_v44 = vld [vmem:[#allocation7 + $0x1b0] sm:$0xff]   ;;  %v3816_v4 = vld [vmem:[#allocation7 + $0x1f8] sm:$0xff]  }
 0x1c1   : > { %v849_v56 = vsel %vm4720_vm12, %v768_v25, 0.0  ;;  %v4821_v1 = vpack.c.bf16 %v768_v25, %v767_v49  ;;  %v847_v50 = vsel %vm4769_vm4, %v766_v31, 0.0  ;;  %v4825_v16 = vpack.c.bf16 %v766_v31, %v765_v24  ;;  %2817 = vmatprep.mubr.msk.bf16.mxu1 %vm4796_vm7, %v4586_v12  ;;  %3328 = vmatpush3.bf16.msra.mxu1 %v3797_v39  ;;  %vm4834_vm3 = vmand %vm5509_vm1, %vm803_vm13  ;;  %v3801_v24 = vld [vmem:[#allocation7 + $0x128] sm:$0xff]  }
 0x1c2   : > { %v874_v3 = vrot.slane %v849_v56, 7  ;;  %v997_v6 = vrot.slane %v849_v56, 1  ;;  %v873_v9 = vrot.slane %v847_v50, 7  ;;  %v996_v22 = vrot.slane %v847_v50, 1  ;;  %3329 = vmatprep.subr.bf16.mxu1 %v3800_v13  ;;  %3395 = vmatprep.subr.bf16.mxu0 %v3814_v0  ;;  %vm4875_vm13 = vmand %vm792_vm11, %vm802_vm15  ;;  %v3812_v50 = vld [vmem:[#allocation7 + $0x178] sm:$0xff]  }
 0x1c3   : > { %v771_v30 = vmax.f32 %v4814_v2, 0.0  ;;  %v722_v32 = vmul.f32 %v4435_v57, %v684_v11  ;;  %v1006_v20 = vsel %vm1000_vm8, %v985_v28, %v995_v40  ;;  %v1016_v21 = vsel %vm1000_vm8, %v995_v40, %v985_v28  ;;  %2868 = vmatmul.mubr.msk.bf16.gmra.mrb[32].mxu0 %vm4568_vm10, %v4745_v62  ;;  %vm4887_vm1 = vmpackc.low %vm4654_vm0, %vm4654_vm0 }
 0x1c4   : > { %v884_v39 = vsel %vm877_vm5, %v863_v42, %v873_v9  ;;  %v894_v11 = vsel %vm877_vm5, %v873_v9, %v863_v42  ;;  %v4856_v36 = vpack.c.bf16 %v1016_v21, %v1006_v20  ;;  %v725_v43 = vmul.f32 %v3514_v33, %v4435_v57  ;;  %2871 = vmatprep.mubr.msk.bf16.mxu0 %vm4558_vm6, %v4807_v48  ;;  %vm4961_vm0 = vmpackc.low %vm4630_vm14, %vm4630_vm14  ;;  %v3831_v42 = vld [vmem:[#allocation8 + $0x28] sm:$0xff]  }
 0x1c5   : > { %v852_v14 = vsel %vm4834_vm3, %v771_v30, 0.0  ;;  %v4864_v28 = vpack.c.bf16 %v884_v39, %v894_v11  ;;  %v749_v35 = vadd.f32 %v4445_v61, %v722_v32  ;;  %v723_v40 = vmul.f32 %v4435_v57, %v687_v45  ;;  %3330 = vmatpush3.bf16.msra.mxu1 %v3801_v24  ;;  %v3807_v45 = vld [vmem:[#allocation7 + $0x130] sm:$0xff]   ;;  %3396 = vmatpush3.bf16.msra.mxu0 %v3815_v44  ;;  %v3817_v24 = vld [vmem:[#allocation7 + $0x1b8] sm:$0xff]   ;;  %vm2983_vm14 = vmpackc.low %vm4834_vm3, %vm4834_vm3 }
 0x1c6   : > { %v866_v33 = vrot.slane %v852_v14, 7  ;;  %v989_v25 = vrot.slane %v852_v14, 1  ;;  %v752_v13 = vadd.f32 %v4445_v61, %v725_v43  ;;  %v885_v57 = vsel %vm877_vm5, %v864_v59, %v874_v3  ;;  %3331 = vmatprep.subr.bf16.mxu1 %v3806_v38  ;;  %3397 = vmatprep.subr.bf16.mxu0 %v3816_v4  ;;  %v3813_v39 = vld [vmem:[#allocation7 + $0x138] sm:$0xff]  }
 0x1c7   : > { %v769_v26 = vmax.f32 %v749_v35, 0.0  ;;  %v750_v2 = vadd.f32 %v4445_v61, %v723_v40  ;;  %v895_v55 = vsel %vm877_vm5, %v874_v3, %v864_v59  ;;  %v1007_v56 = vsel %vm1000_vm8, %v986_v52, %v996_v22 }
 0x1c8   : > { %v772_v0 = vmax.f32 %v752_v13, 0.0  ;;  %v4898_v51 = vpack.c.bf16 %v885_v57, %v895_v55  ;;  %v1017_v9 = vsel %vm1000_vm8, %v996_v22, %v986_v52  ;;  %v1008_v61 = vsel %vm1000_vm8, %v987_v5, %v997_v6  ;;  %2820 = vmatmul.mubr.msk.bf16.gmra.mrb[12].mxu1 %vm4558_vm6, %v4671_v8 }
 0x1c9   : > { %v850_v59 = vsel %vm4875_vm13, %v769_v26, 0.0  ;;  %v770_v3 = vmax.f32 %v750_v2, 0.0  ;;  %v4911_v32 = vpack.c.bf16 %v1017_v9, %v1007_v56  ;;  %v1018_v52 = vsel %vm1000_vm8, %v997_v6, %v987_v5  ;;  %2823 = vmatprep.mubr.msk.bf16.mxu1 %vm4887_vm1, %v4734_v27  ;;  %3332 = vmatpush3.bf16.msra.mxu1 %v3807_v45  ;;  %v3818_v6 = vld [vmem:[#allocation7 + $0x200] sm:$0xff]  }
 0x1ca   : > { %v865_v22 = vrot.slane %v850_v59, 7  ;;  %v988_v20 = vrot.slane %v850_v59, 1  ;;  %v853_v21 = vsel %vm4834_vm3, %v772_v0, 0.0  ;;  %v4922_v38 = vpack.c.bf16 %v772_v0, %v771_v30  ;;  %3333 = vmatprep.subr.bf16.mxu1 %v3812_v50  ;;  %3398 = vmatpush3.bf16.msra.mxu0 %v3817_v24 }
 0x1cb   : > { %v876_v11 = vrot.slane %v853_v21, 7  ;;  %v999_v43 = vrot.slane %v853_v21, 1  ;;  %v851_v60 = vsel %vm4875_vm13, %v770_v3, 0.0  ;;  %v4926_v5 = vpack.c.bf16 %v770_v3, %v769_v26  ;;  %2874 = vmatmul.mubr.msk.bf16.gmra.mrb[36].mxu0 %vm4568_vm10, %v4811_v53  ;;  %3547 = vmatprep.subr.bf16.mxu0 %v3826_v58 }
 0x1cc   : > { %v875_v44 = vrot.slane %v851_v60, 7  ;;  %v998_v14 = vrot.slane %v851_v60, 1  ;;  %v4928_v35 = vpack.c.bf16 %v1018_v52, %v1008_v61  ;;  %2877 = vmatprep.mubr.msk.bf16.mxu0 %vm4558_vm6, %v4864_v28 }
 0x1cd   : > { %v4935_v30 = vsel %vm877_vm5, %v866_v33, %v876_v11  ;;  %v4939_v40 = vsel %vm877_vm5, %v876_v11, %v866_v33  ;;  %v4943_v4 = vsel %vm1000_vm8, %v989_v25, %v999_v43  ;;  %v4947_v13 = vsel %vm1000_vm8, %v999_v43, %v989_v25  ;;  %3334 = vmatpush3.bf16.msra.mxu1 %v3813_v39  ;;  %v3833_v43 = vld [vmem:[#allocation8 + $0x38] sm:$0xff]  }
 0x1ce   : > { %v886_v57 = vsel %vm877_vm5, %v865_v22, %v875_v44  ;;  %v896_v45 = vsel %vm877_vm5, %v875_v44, %v865_v22  ;;  %v1009_v33 = vsel %vm1000_vm8, %v988_v20, %v998_v14  ;;  %3515 = vmatprep.subr.bf16.mxu1 %v3818_v6  ;;  %v1019_v2 = vsel %vm1000_vm8, %v998_v14, %v988_v20  ;;  %vm4990_vm5 = vmpackc.low %vm4769_vm4, %vm4769_vm4 }
 0x1cf   : > { %v4965_v26 = vpack.c.bf16 %v886_v57, %v896_v45  ;;  %v2987_v55 = vpack.c.bf16 %v4935_v30, %v4939_v40  ;;  %v3011_v56 = vpack.c.bf16 %v4947_v13, %v4943_v4  ;;  %v4973_v50 = vpack.c.bf16 %v1019_v2, %v1009_v33  ;;  %vm5009_vm8 = vmpackc.low %vm4720_vm12, %vm4720_vm12 }
 0x1d0   : > { %2826 = vmatmul.mubr.msk.bf16.gmra.mrb[16].mxu1 %vm4558_vm6, %v4776_v15  ;;  %vm5522_vm12 = vmpackc.low %vm4462_vm9, %vm4462_vm9 }
 0x1d1   : > { %2829 = vmatprep.mubr.msk.bf16.mxu1 %vm4961_vm0, %v4707_v37  ;;  %vm2938_vm9 = vmpackc.low %vm4875_vm13, %vm4875_vm13 }
 0x1d3   : > { %2880 = vmatmul.mubr.msk.bf16.gmra.mrb[40].mxu0 %vm4568_vm10, %v4856_v36 }
 0x1d4   : > { %2883 = vmatprep.mubr.msk.bf16.mxu0 %vm4558_vm6, %v4898_v51 }
 0x1d8   : > { %2832 = vmatmul.mubr.msk.bf16.gmra.mrb[20].mxu1 %vm4558_vm6, %v4807_v48 }
 0x1d9   : > { %2835 = vmatprep.mubr.msk.bf16.mxu1 %vm4990_vm5, %v4825_v16 }
 0x1db   : > { %2886 = vmatmul.mubr.msk.bf16.gmra.mrb[44].mxu0 %vm4568_vm10, %v4911_v32 }
 0x1dc   : > { %2889 = vmatprep.mubr.msk.bf16.mxu0 %vm4558_vm6, %v4965_v26 }
 0x1e0   : > { %2838 = vmatmul.mubr.msk.bf16.gmra.mrb[24].mxu1 %vm4558_vm6, %v4864_v28 }
 0x1e1   : > { %2841 = vmatprep.mubr.msk.bf16.mxu1 %vm5009_vm8, %v4821_v1 }
 0x1e3   : > { %2892 = vmatmul.mubr.msk.bf16.gmra.mrb[48].mxu0 %vm4568_vm10, %v4928_v35 }
 0x1e4   : > { %2943 = vmatprep.mubr.msk.bf16.mxu0 %vm4699_vm2, %v4595_v23 }
 0x1e8   : > { %2844 = vmatmul.mubr.msk.bf16.gmra.mrb[28].mxu1 %vm4558_vm6, %v4898_v51 }
 0x1e9   : > { %2895 = vmatprep.mubr.msk.bf16.mxu1 %vm4568_vm10, %v4639_v47  ;;  %v3820_v47 = vld [vmem:[#allocation7 + $0x210] sm:$0xff]  }
 0x1eb   : > { %2946 = vmatmul.mubr.msk.bf16.vlgmr.msra.gmra.mrb[52].mxu0 %vm4558_vm6, %v4634_v18  ;;  %v3823_v18 = vld [vmem:[#allocation7 + $0x228] sm:$0xff]  }
 0x1ec   : > { %2949 = vmatprep.mubr.msk.bf16.mxu0 %vm4796_vm7, %v4586_v12  ;;  %3548 = vmatpush3.bf16.msra.mxu0 %v3826_v58 }
 0x1f0   : > { %2898 = vmatmul.mubr.msk.bf16.vlgmr.msra.gmra.mrb[32].mxu1 %vm5522_vm12, %v4505_v29  ;;  %v3822_v29 = vld [vmem:[#allocation7 + $0x220] sm:$0xff]  }
 0x1f1   : > { %3516 = vmatpush3.bf16.msra.mxu1 %v3818_v6  ;;  %2901 = vmatprep.mubr.msk.bf16.mxu1 %vm4568_vm10, %v4686_v19 }
 0x1f2   : > { %3517 = vmatprep.subr.bf16.mxu1 %v3819_v41 }
 0x1f3   : > { %2952 = vmatmul.mubr.msk.bf16.gmra.mrb[56].mxu0 %vm4558_vm6, %v4671_v8  ;;  %v3825_v8 = vld [vmem:[#allocation7 + $0x238] sm:$0xff]  }
 0x1f4   : > { %2955 = vmatprep.mubr.msk.bf16.mxu0 %vm4887_vm1, %v4734_v27 }
 0x1f5   : > { %3518 = vmatpush3.bf16.msra.mxu1 %v3819_v41 }
 0x1f6   : > { %3519 = vmatprep.subr.bf16.mxu1 %v3820_v47 }
 0x1f8   : > { %2904 = vmatmul.mubr.msk.bf16.gmra.mrb[36].mxu1 %vm4699_vm2, %v4595_v23  ;;  %v3824_v23 = vld [vmem:[#allocation7 + $0x230] sm:$0xff]  }
 0x1f9   : > { %2907 = vmatprep.mubr.msk.bf16.mxu1 %vm4568_vm10, %v4745_v62  ;;  %3520 = vmatpush3.bf16.msra.mxu1 %v3820_v47 }
 0x1fa   : > { %3521 = vmatprep.subr.bf16.mxu1 %v3821_v7 }
 0x1fb   : > { %2958 = vmatmul.mubr.msk.bf16.gmra.mrb[60].mxu0 %vm4558_vm6, %v4776_v15 }
 0x1fc   : > { %2961 = vmatprep.mubr.msk.bf16.mxu0 %vm4961_vm0, %v4707_v37 }
 0x1fd   : > { %3522 = vmatpush3.bf16.msra.mxu1 %v3821_v7 }
 0x1fe   : > { %3523 = vmatprep.subr.bf16.mxu1 %v3822_v29 }
 0x200   : > { %2910 = vmatmul.mubr.msk.bf16.gmra.mrb[40].mxu1 %vm4796_vm7, %v4586_v12  ;;  %v3827_v12 = vld [vmem:[#allocation8 + $0x8] sm:$0xff]  }
 0x201   : > { %2913 = vmatprep.mubr.msk.bf16.mxu1 %vm4568_vm10, %v4811_v53  ;;  %3524 = vmatpush3.bf16.msra.mxu1 %v3822_v29 }
 0x202   : > { %3525 = vmatprep.subr.bf16.mxu1 %v3823_v18  ;;  %3549 = vmatprep.subr.bf16.mxu0 %v3827_v12 }
 0x203   : > { %2964 = vmatmul.mubr.msk.bf16.gmra.mrb[64].mxu0 %vm4558_vm6, %v4807_v48 }
 0x204   : > { %2967 = vmatprep.mubr.msk.bf16.mxu0 %vm4990_vm5, %v4825_v16  ;;  %3550 = vmatpush3.bf16.msra.mxu0 %v3827_v12 }
 0x205   : > { %3526 = vmatpush3.bf16.msra.mxu1 %v3823_v18 }
 0x206   : > { %3527 = vmatprep.subr.bf16.mxu1 %v3824_v23 }
 0x208   : > { %2916 = vmatmul.mubr.msk.bf16.gmra.mrb[44].mxu1 %vm4887_vm1, %v4734_v27 }
 0x209   : > { %2919 = vmatprep.mubr.msk.bf16.mxu1 %vm4568_vm10, %v4856_v36  ;;  %3528 = vmatpush3.bf16.msra.mxu1 %v3824_v23 }
 0x20a   : > { %3529 = vmatprep.subr.bf16.mxu1 %v3825_v8 }
 0x20b   : > { %2970 = vmatmul.mubr.msk.bf16.gmra.mrb[68].mxu0 %vm4558_vm6, %v4864_v28 }
 0x20c   : > { %2973 = vmatprep.mubr.msk.bf16.mxu0 %vm5009_vm8, %v4821_v1 }
 0x20d   : > { %3530 = vmatpush3.bf16.msra.mxu1 %v3825_v8 }
 0x20e   : > { %3579 = vmatprep.subr.bf16.mxu1 %v3826_v58 }
 0x210   : > { %2922 = vmatmul.mubr.msk.bf16.gmra.mrb[48].mxu1 %vm4961_vm0, %v4707_v37  ;;  %v3829_v37 = vld [vmem:[#allocation8 + $0x18] sm:$0xff]  }
 0x211   : > { %2925 = vmatprep.mubr.msk.bf16.mxu1 %vm4568_vm10, %v4911_v32 }
 0x213   : > { %2976 = vmatmul.mubr.msk.bf16.gmra.mrb[72].mxu0 %vm4558_vm6, %v4898_v51 }
 0x214   : > { %2979 = vmatprep.mubr.msk.bf16.mxu0 %vm2938_vm9, %v4926_v5 }
 0x218   : > { %2928 = vmatmul.mubr.msk.bf16.gmra.mrb[52].mxu1 %vm4990_vm5, %v4825_v16 }
 0x219   : > { %2931 = vmatprep.mubr.msk.bf16.mxu1 %vm4568_vm10, %v4928_v35 }
 0x21b   : > { %2982 = vmatmul.mubr.msk.bf16.gmra.mrb[76].mxu0 %vm4558_vm6, %v4965_v26 }
 0x21c   : > { %2985 = vmatprep.mubr.msk.bf16.mxu0 %vm2983_vm14, %v4922_v38 }
 0x220   : > { %2934 = vmatmul.mubr.msk.bf16.gmra.mrb[56].mxu1 %vm5009_vm8, %v4821_v1 }
 0x221   : > { %2937 = vmatprep.mubr.msk.bf16.mxu1 %vm4568_vm10, %v4973_v50 }
 0x223   : > { %2988 = vmatmul.mubr.msk.bf16.gmra.mrb[80].mxu0 %vm4558_vm6, %v2987_v55 }
 0x228   : > { %2940 = vmatmul.mubr.msk.bf16.gmra.mrb[60].mxu1 %vm2938_vm9, %v4926_v5 }
 0x229   : > { %3531 = vmatprep.mubr.msk.bf16.mxu1 %vm4568_vm10, %v4686_v19  ;;  %v3828_v19 = vld [vmem:[#allocation8 + $0x10] sm:$0xff]  }
 0x22a   : > { %3551 = vmatprep.subr.bf16.mxu0 %v3828_v19 }
 0x22b   : > { %3552 = vmatpush3.bf16.msra.mxu0 %v3828_v19 }
 0x22c   : > { %3553 = vmatprep.subr.bf16.mxu0 %v3829_v37 }
 0x22f   : > { %3554 = vmatpush3.bf16.msra.mxu0 %v3829_v37 }
 0x230   : > { %3532 = vmatmul.mubr.msk.bf16.vlgmr.msra.gmra.mrb[64].mxu1 %vm4568_vm10, %v4745_v62  ;;  %3555 = vmatprep.subr.bf16.mxu0 %v3830_v10 }
 0x231   : > { %3535 = vmatprep.mubr.msk.bf16.mxu1 %vm4568_vm10, %v4811_v53  ;;  %3587 = vmatpush3.bf16.msra.mxu1 %v3826_v58 }
 0x232   : > { %3580 = vmatprep.subr.bf16.mxu1 %v3827_v12 }
 0x233   : > { %3556 = vmatpush3.bf16.msra.mxu0 %v3830_v10 }
 0x234   : > { %3557 = vmatprep.subr.bf16.mxu0 %v3831_v42 }
 0x235   : > { %3588 = vmatpush3.bf16.msra.mxu1 %v3827_v12 }
 0x236   : > { %3581 = vmatprep.subr.bf16.mxu1 %v3828_v19 }
 0x237   : > { %3558 = vmatpush3.bf16.msra.mxu0 %v3831_v42 }
 0x238   : > { %3536 = vmatmul.mubr.msk.bf16.gmra.mrb[68].mxu1 %vm4568_vm10, %v4856_v36 }
 0x239   : > { %3539 = vmatprep.mubr.msk.bf16.mxu1 %vm4568_vm10, %v4911_v32  ;;  %3589 = vmatpush3.bf16.msra.mxu1 %v3828_v19  ;;  %v3832_v32 = vld [vmem:[#allocation8 + $0x30] sm:$0xff]  }
 0x23a   : > { %3582 = vmatprep.subr.bf16.mxu1 %v3829_v37  ;;  %3559 = vmatprep.subr.bf16.mxu0 %v3832_v32 }
 0x23b   : > { %3560 = vmatpush3.bf16.msra.mxu0 %v3832_v32 }
 0x23c   : > { %3561 = vmatprep.subr.bf16.mxu0 %v3833_v43 }
 0x23d   : > { %3590 = vmatpush3.bf16.msra.mxu1 %v3829_v37 }
 0x23e   : > { %3583 = vmatprep.subr.bf16.mxu1 %v3830_v10 }
 0x23f   : > { %3562 = vmatpush3.bf16.msra.mxu0 %v3833_v43 }
 0x240   : > { %3540 = vmatmul.mubr.msk.bf16.gmra.mrb[72].mxu1 %vm4568_vm10, %v4928_v35 }
 0x241   : > { %3543 = vmatprep.mubr.msk.bf16.mxu1 %vm4568_vm10, %v4973_v50  ;;  %3591 = vmatpush3.bf16.msra.mxu1 %v3830_v10 }
 0x242   : > { %3584 = vmatprep.subr.bf16.mxu1 %v3831_v42 }
 0x245   : > { %3592 = vmatpush3.bf16.msra.mxu1 %v3831_v42 }
 0x246   : > { %3585 = vmatprep.subr.bf16.mxu1 %v3832_v32 }
 0x248   : > { %3544 = vmatmul.mubr.msk.bf16.gmra.mrb[76].mxu1 %vm4568_vm10, %v3011_v56 }
 0x249   : > { %3593 = vmatpush3.bf16.msra.mxu1 %v3832_v32 }
 0x24a   : > { %3586 = vmatprep.subr.bf16.mxu1 %v3833_v43 }
 0x24d   : > { %3594 = vmatpush3.bf16.msra.mxu1 %v3833_v43 }
 0x27e   : > { %v3271_v34 = vpop.f32.mrb[20].mxu0 }
 0x27f   : > { %v3272_v27 = vpop.f32.mrb[21].mxu0 }
 0x280   : > { %v3273_v63 = vadd.f32 %v3272_v27, %v3271_v34  ;;  %v3274_v62 = vpop.f32.mrb[22].mxu0 }
 0x281   : > { %v3275_v15 = vpop.f32.mrb[23].mxu0 }
 0x282   : > { %v3276_v48 = vadd.f32 %v3275_v15, %v3274_v62 }
 0x283   : > { %v3207_v17 = vpop.f32.mrb[0].mxu1 }
 0x284   : > { %v3208_v53 = vpop.f32.mrb[1].mxu1 }
 0x285   : > { %v3209_v1 = vadd.f32 %v3208_v53, %v3207_v17  ;;  %v3210_v16 = vpop.f32.mrb[2].mxu1 }
 0x286   : > { %v3211_v49 = vpop.f32.mrb[3].mxu1  ;;  %v3277_v31 = vpop.f32.mrb[24].mxu0 }
 0x287   : > { %v5152_v36 = vadd.f32 %v3273_v63, %v3209_v1  ;;  %v3212_v28 = vadd.f32 %v3211_v49, %v3210_v16  ;;  %v3278_v0 = vpop.f32.mrb[25].mxu0 }
 0x288   : > { %v3279_v9 = vadd.f32 %v3278_v0, %v3277_v31  ;;  %v3280_v61 = vpop.f32.mrb[26].mxu0 }
 0x289   : > { %v5154_v51 = vadd.f32 %v3276_v48, %v3212_v28  ;;  %v3281_v24 = vpop.f32.mrb[27].mxu0 }
 0x28a   : > { %v3282_v3 = vadd.f32 %v3281_v24, %v3280_v61 }
 0x28b   : > { %v3213_v59 = vpop.f32.mrb[4].mxu1 }
 0x28c   : > { %v3214_v52 = vpop.f32.mrb[5].mxu1 }
 0x28d   : > { %v3215_v22 = vadd.f32 %v3214_v52, %v3213_v59  ;;  %v3216_v20 = vpop.f32.mrb[6].mxu1 }
 0x28e   : > { %v3217_v21 = vpop.f32.mrb[7].mxu1  ;;  %v3283_v11 = vpop.f32.mrb[28].mxu0 }
 0x28f   : > { %v5156_v38 = vadd.f32 %v3279_v9, %v3215_v22  ;;  %v3218_v39 = vadd.f32 %v3217_v21, %v3216_v20  ;;  %v3284_v60 = vpop.f32.mrb[29].mxu0 }
 0x290   : > { %v3285_v6 = vadd.f32 %v3284_v60, %v3283_v11  ;;  %v3286_v44 = vpop.f32.mrb[30].mxu0 }
 0x291   : > { %v5158_v5 = vadd.f32 %v3282_v3, %v3218_v39  ;;  %v3287_v14 = vpop.f32.mrb[31].mxu0 }
 0x292   : > { %v3288_v30 = vadd.f32 %v3287_v14, %v3286_v44 }
 0x293   : > { %v3219_v35 = vpop.f32.mrb[8].mxu1 }
 0x294   : > { %v3220_v40 = vpop.f32.mrb[9].mxu1 }
 0x295   : > { %v3221_v4 = vadd.f32 %v3220_v40, %v3219_v35  ;;  %v3222_v13 = vpop.f32.mrb[10].mxu1 }
 0x296   : > { %v3223_v57 = vpop.f32.mrb[11].mxu1  ;;  %v3289_v25 = vpop.f32.mrb[32].mxu0 }
 0x297   : > { %v5160_v45 = vadd.f32 %v3285_v6, %v3221_v4  ;;  %v3224_v33 = vadd.f32 %v3223_v57, %v3222_v13  ;;  %v3290_v26 = vpop.f32.mrb[33].mxu0 }
 0x298   : > { %v3291_v55 = vadd.f32 %v3290_v26, %v3289_v25  ;;  %v3292_v56 = vpop.f32.mrb[34].mxu0 }
 0x299   : > { %v5162_v2 = vadd.f32 %v3288_v30, %v3224_v33  ;;  %v3293_v50 = vpop.f32.mrb[35].mxu0 }
 0x29a   : > { %v3294_v46 = vadd.f32 %v3293_v50, %v3292_v56 }
 0x29b   : > { %v3225_v54 = vpop.f32.mrb[12].mxu1 }
 0x29c   : > { %v3226_v41 = vpop.f32.mrb[13].mxu1 }
 0x29d   : > { %v3227_v47 = vadd.f32 %v3226_v41, %v3225_v54  ;;  %v3228_v7 = vpop.f32.mrb[14].mxu1 }
 0x29e   : > { %v3229_v29 = vpop.f32.mrb[15].mxu1  ;;  %v3295_v8 = vpop.f32.mrb[36].mxu0 }
 0x29f   : > { %v5164_v18 = vadd.f32 %v3291_v55, %v3227_v47  ;;  %v3230_v23 = vadd.f32 %v3229_v29, %v3228_v7  ;;  %v3296_v58 = vpop.f32.mrb[37].mxu0 }
 0x2a0   : > { %v3297_v19 = vadd.f32 %v3296_v58, %v3295_v8  ;;  %v3298_v34 = vpop.f32.mrb[38].mxu0 }
 0x2a1   : > { %v5166_v12 = vadd.f32 %v3294_v46, %v3230_v23  ;;  %v3299_v37 = vpop.f32.mrb[39].mxu0 }
 0x2a2   : > { %v3300_v63 = vadd.f32 %v3299_v37, %v3298_v34 }
 0x2a3   : > { %v3231_v27 = vpop.f32.mrb[16].mxu1 }
 0x2a4   : > { %v3232_v62 = vpop.f32.mrb[17].mxu1 }
 0x2a5   : > { %v3233_v10 = vadd.f32 %v3232_v62, %v3231_v27  ;;  %v3234_v15 = vpop.f32.mrb[18].mxu1 }
 0x2a6   : > { %v3235_v17 = vpop.f32.mrb[19].mxu1  ;;  %v3301_v1 = vpop.f32.mrb[40].mxu0 }
 0x2a7   : > { %v5168_v48 = vadd.f32 %v3297_v19, %v3233_v10  ;;  %v3236_v53 = vadd.f32 %v3235_v17, %v3234_v15  ;;  %v3302_v16 = vpop.f32.mrb[41].mxu0 }
 0x2a8   : > { %v3303_v28 = vadd.f32 %v3302_v16, %v3301_v1  ;;  %v3304_v31 = vpop.f32.mrb[42].mxu0 }
 0x2a9   : > { %v5170_v49 = vadd.f32 %v3300_v63, %v3236_v53  ;;  %v3305_v42 = vpop.f32.mrb[43].mxu0 }
 0x2aa   : > { %v3306_v9 = vadd.f32 %v3305_v42, %v3304_v31 }
 0x2ab   : > { %v3237_v0 = vpop.f32.mrb[20].mxu1 }
 0x2ac   : > { %v3238_v61 = vpop.f32.mrb[21].mxu1 }
 0x2ad   : > { %v3239_v24 = vadd.f32 %v3238_v61, %v3237_v0  ;;  %v3240_v59 = vpop.f32.mrb[22].mxu1 }
 0x2ae   : > { %v3241_v3 = vpop.f32.mrb[23].mxu1  ;;  %v3307_v22 = vpop.f32.mrb[44].mxu0 }
 0x2af   : > { %v5172_v32 = vadd.f32 %v3303_v28, %v3239_v24  ;;  %v3242_v52 = vadd.f32 %v3241_v3, %v3240_v59  ;;  %v3308_v20 = vpop.f32.mrb[45].mxu0 }
 0x2b0   : > { %v3309_v39 = vadd.f32 %v3308_v20, %v3307_v22  ;;  %v3310_v11 = vpop.f32.mrb[46].mxu0 }
 0x2b1   : > { %v5174_v21 = vadd.f32 %v3306_v9, %v3242_v52  ;;  %v3311_v43 = vpop.f32.mrb[47].mxu0 }
 0x2b2   : > { %v3312_v6 = vadd.f32 %v3311_v43, %v3310_v11 }
 0x2b3   : > { %v3243_v60 = vpop.f32.mrb[24].mxu1 }
 0x2b4   : > { %v3244_v44 = vpop.f32.mrb[25].mxu1 }
 0x2b5   : > { %v3245_v14 = vadd.f32 %v3244_v44, %v3243_v60  ;;  %v3246_v35 = vpop.f32.mrb[26].mxu1 }
 0x2b6   : > { %v3247_v30 = vpop.f32.mrb[27].mxu1  ;;  %v3313_v13 = vpop.f32.mrb[48].mxu0 }
 0x2b7   : > { %v5176_v40 = vadd.f32 %v3309_v39, %v3245_v14  ;;  %v3248_v4 = vadd.f32 %v3247_v30, %v3246_v35  ;;  %v3314_v57 = vpop.f32.mrb[49].mxu0 }
 0x2b8   : > { %v3315_v25 = vadd.f32 %v3314_v57, %v3313_v13  ;;  %v3316_v26 = vpop.f32.mrb[50].mxu0 }
 0x2b9   : > { %v5178_v33 = vadd.f32 %v3312_v6, %v3248_v4  ;;  %v3317_v55 = vpop.f32.mrb[51].mxu0 }
 0x2ba   : > { %v3318_v50 = vadd.f32 %v3317_v55, %v3316_v26 }
 0x2bb   : > { %v3249_v56 = vpop.f32.mrb[28].mxu1 }
 0x2bc   : > { %v3250_v54 = vpop.f32.mrb[29].mxu1 }
 0x2bd   : > { %v3251_v46 = vadd.f32 %v3250_v54, %v3249_v56  ;;  %v3252_v41 = vpop.f32.mrb[30].mxu1 }
 0x2be   : > { %v3253_v47 = vpop.f32.mrb[31].mxu1  ;;  %v3399_v23 = vpop.f32.mrb[52].mxu0 }
 0x2bf   : > { %v5180_v7 = vadd.f32 %v3315_v25, %v3251_v46  ;;  %v3254_v29 = vadd.f32 %v3253_v47, %v3252_v41  ;;  %v3400_v8 = vpop.f32.mrb[53].mxu0 }
 0x2c0   : > { %v3401_v19 = vadd.f32 %v3400_v8, %v3399_v23  ;;  %v3402_v34 = vpop.f32.mrb[54].mxu0 }
 0x2c1   : > { %v5182_v58 = vadd.f32 %v3318_v50, %v3254_v29  ;;  %v3403_v37 = vpop.f32.mrb[55].mxu0 }
 0x2c2   : > { %v3404_v63 = vadd.f32 %v3403_v37, %v3402_v34 }
 0x2c3   : > { %v3335_v27 = vpop.f32.mrb[32].mxu1 }
 0x2c4   : > { %v3336_v62 = vpop.f32.mrb[33].mxu1 }
 0x2c5   : > { %v3337_v10 = vadd.f32 %v3336_v62, %v3335_v27  ;;  %v3338_v15 = vpop.f32.mrb[34].mxu1 }
 0x2c6   : > { %v3339_v17 = vpop.f32.mrb[35].mxu1  ;;  %v3405_v16 = vpop.f32.mrb[56].mxu0 }
 0x2c7   : > { %v1868_v53 = vadd.f32 %v3337_v10, %v5152_v36  ;;  %v3340_v1 = vadd.f32 %v3339_v17, %v3338_v15  ;;  %v3406_v28 = vpop.f32.mrb[57].mxu0 }
 0x2c8   : > { %v3407_v42 = vadd.f32 %v3406_v28, %v3405_v16  ;;  %v3408_v0 = vpop.f32.mrb[58].mxu0 }
 0x2c9   : > { %v1871_v31 = vadd.f32 %v3340_v1, %v5154_v51  ;;  %v5186_v9 = vadd.f32 %v3401_v19, %v1868_v53  ;;  %v3409_v61 = vpop.f32.mrb[59].mxu0 }
 0x2ca   : > { %v3410_v59 = vadd.f32 %v3409_v61, %v3408_v0 }
 0x2cb   : > { %v3341_v24 = vpop.f32.mrb[36].mxu1  ;;  %v5188_v3 = vadd.f32 %v3404_v63, %v1871_v31 }
 0x2cc   : > { %v3342_v52 = vpop.f32.mrb[37].mxu1 }
 0x2cd   : > { %v3343_v22 = vadd.f32 %v3342_v52, %v3341_v24  ;;  %v3344_v20 = vpop.f32.mrb[38].mxu1 }
 0x2ce   : > { %v3345_v39 = vpop.f32.mrb[39].mxu1  ;;  %v3411_v43 = vpop.f32.mrb[60].mxu0 }
 0x2cf   : > { %v1876_v36 = vadd.f32 %v3343_v22, %v5156_v38  ;;  %v3346_v11 = vadd.f32 %v3345_v39, %v3344_v20  ;;  %v3412_v60 = vpop.f32.mrb[61].mxu0 }
 0x2d0   : > { %v3413_v6 = vadd.f32 %v3412_v60, %v3411_v43  ;;  %v3414_v44 = vpop.f32.mrb[62].mxu0 }
 0x2d1   : > { %v1879_v51 = vadd.f32 %v3346_v11, %v5158_v5  ;;  %v5192_v14 = vadd.f32 %v3407_v42, %v1876_v36  ;;  %v3415_v35 = vpop.f32.mrb[63].mxu0 }
 0x2d2   : > { %v3416_v4 = vadd.f32 %v3415_v35, %v3414_v44 }
 0x2d3   : > { %v3347_v30 = vpop.f32.mrb[40].mxu1  ;;  %v5194_v13 = vadd.f32 %v3410_v59, %v1879_v51 }
 0x2d4   : > { %v3348_v57 = vpop.f32.mrb[41].mxu1 }
 0x2d5   : > { %v3349_v25 = vadd.f32 %v3348_v57, %v3347_v30  ;;  %v3350_v26 = vpop.f32.mrb[42].mxu1 }
 0x2d6   : > { %v3351_v55 = vpop.f32.mrb[43].mxu1  ;;  %v3417_v50 = vpop.f32.mrb[64].mxu0 }
 0x2d7   : > { %v1884_v38 = vadd.f32 %v3349_v25, %v5160_v45  ;;  %v3352_v56 = vadd.f32 %v3351_v55, %v3350_v26  ;;  %v3418_v54 = vpop.f32.mrb[65].mxu0 }
 0x2d8   : > { %v3419_v46 = vadd.f32 %v3418_v54, %v3417_v50  ;;  %v3420_v41 = vpop.f32.mrb[66].mxu0 }
 0x2d9   : > { %v1887_v5 = vadd.f32 %v3352_v56, %v5162_v2  ;;  %v5198_v47 = vadd.f32 %v3413_v6, %v1884_v38  ;;  %v3421_v29 = vpop.f32.mrb[67].mxu0 }
 0x2da   : > { %v3422_v8 = vadd.f32 %v3421_v29, %v3420_v41 }
 0x2db   : > { %v3353_v23 = vpop.f32.mrb[44].mxu1  ;;  %v5200_v19 = vadd.f32 %v3416_v4, %v1887_v5 }
 0x2dc   : > { %v3354_v34 = vpop.f32.mrb[45].mxu1 }
 0x2dd   : > { %v3355_v37 = vadd.f32 %v3354_v34, %v3353_v23  ;;  %v3356_v27 = vpop.f32.mrb[46].mxu1 }
 0x2de   : > { %v3357_v63 = vpop.f32.mrb[47].mxu1  ;;  %v3423_v10 = vpop.f32.mrb[68].mxu0 }
 0x2df   : > { %v1892_v45 = vadd.f32 %v3355_v37, %v5164_v18  ;;  %v3358_v62 = vadd.f32 %v3357_v63, %v3356_v27  ;;  %v3424_v15 = vpop.f32.mrb[69].mxu0 }
 0x2e0   : > { %v3425_v17 = vadd.f32 %v3424_v15, %v3423_v10  ;;  %v3426_v53 = vpop.f32.mrb[70].mxu0 }
 0x2e1   : > { %v1895_v2 = vadd.f32 %v3358_v62, %v5166_v12  ;;  %v5204_v1 = vadd.f32 %v3419_v46, %v1892_v45  ;;  %v3427_v16 = vpop.f32.mrb[71].mxu0 }
 0x2e2   : > { %v3428_v31 = vadd.f32 %v3427_v16, %v3426_v53 }
 0x2e3   : > { %v3359_v28 = vpop.f32.mrb[48].mxu1  ;;  %v5206_v42 = vadd.f32 %v3422_v8, %v1895_v2 }
 0x2e4   : > { %v3360_v0 = vpop.f32.mrb[49].mxu1 }
 0x2e5   : > { %v3361_v61 = vadd.f32 %v3360_v0, %v3359_v28  ;;  %v3362_v24 = vpop.f32.mrb[50].mxu1 }
 0x2e6   : > { %v3363_v59 = vpop.f32.mrb[51].mxu1  ;;  %v3429_v22 = vpop.f32.mrb[72].mxu0 }
 0x2e7   : > { %v1900_v18 = vadd.f32 %v3361_v61, %v5168_v48  ;;  %v3364_v52 = vadd.f32 %v3363_v59, %v3362_v24  ;;  %v3430_v20 = vpop.f32.mrb[73].mxu0  ;;  %v5233_v59 = vld [vmem:[%s5523_s10] ss:$0 sm:$0xff]  ;;  %s3062_s10 = sshll.u32 %s5528_s16, 5 }
 0x2e8   : > { %v3431_v39 = vadd.f32 %v3430_v20, %v3429_v22  ;;  %v3432_v36 = vpop.f32.mrb[74].mxu0  ;;  %s2563_s19 = sadd.s32 %s3085_s3, %s3062_s10 }
 0x2e9   : > { %v1903_v12 = vadd.f32 %v3364_v52, %v5170_v49  ;;  %v5210_v11 = vadd.f32 %v3425_v17, %v1900_v18  ;;  %v3433_v43 = vpop.f32.mrb[75].mxu0  ;;  %s3063_s1 = sshll.u32 %s2563_s19, 6 }
 0x2ea   : > { %v3434_v51 = vadd.f32 %v3433_v43, %v3432_v36 }
 0x2eb   : > { %v3365_v60 = vpop.f32.mrb[52].mxu1  ;;  %v5212_v6 = vadd.f32 %v3428_v31, %v1903_v12 }
 0x2ec   : > { %v3366_v44 = vpop.f32.mrb[53].mxu1 }
 0x2ed   : > { %v3367_v35 = vadd.f32 %v3366_v44, %v3365_v60  ;;  %v3368_v30 = vpop.f32.mrb[54].mxu1 }
 0x2ee   : > { %v3369_v4 = vpop.f32.mrb[55].mxu1  ;;  %v3435_v25 = vpop.f32.mrb[76].mxu0 }
 0x2ef   : > { %v1908_v48 = vadd.f32 %v3367_v35, %v5172_v32  ;;  %v3370_v57 = vadd.f32 %v3369_v4, %v3368_v30  ;;  %v3436_v26 = vpop.f32.mrb[77].mxu0 }
 0x2f0   : > { %v3437_v55 = vadd.f32 %v3436_v26, %v3435_v25  ;;  %v3438_v38 = vpop.f32.mrb[78].mxu0 }
 0x2f1   : > { %v1911_v49 = vadd.f32 %v3370_v57, %v5174_v21  ;;  %v5216_v56 = vadd.f32 %v3431_v39, %v1908_v48  ;;  %v3439_v50 = vpop.f32.mrb[79].mxu0 }
 0x2f2   : > { %v3440_v5 = vadd.f32 %v3439_v50, %v3438_v38 }
 0x2f3   : > { %v3371_v54 = vpop.f32.mrb[56].mxu1  ;;  %v5218_v46 = vadd.f32 %v3434_v51, %v1911_v49 }
 0x2f4   : > { %v3372_v41 = vpop.f32.mrb[57].mxu1 }
 0x2f5   : > { %v3373_v29 = vadd.f32 %v3372_v41, %v3371_v54  ;;  %v3374_v23 = vpop.f32.mrb[58].mxu1 }
 0x2f6   : > { %v3375_v8 = vpop.f32.mrb[59].mxu1  ;;  %v3441_v37 = vpop.f32.mrb[80].mxu0 }
 0x2f7   : > { %v1916_v32 = vadd.f32 %v3373_v29, %v5176_v40  ;;  %v3376_v34 = vadd.f32 %v3375_v8, %v3374_v23  ;;  %v3442_v27 = vpop.f32.mrb[81].mxu0 }
 0x2f8   : > { %v3443_v63 = vadd.f32 %v3442_v27, %v3441_v37  ;;  %v3444_v45 = vpop.f32.mrb[82].mxu0 }
 0x2f9   : > { %v1919_v21 = vadd.f32 %v3376_v34, %v5178_v33  ;;  %v5222_v62 = vadd.f32 %v3437_v55, %v1916_v32  ;;  %v3445_v10 = vpop.f32.mrb[83].mxu0 }
 0x2fa   : > { %v3446_v2 = vadd.f32 %v3445_v10, %v3444_v45 }
 0x2fb   : > { %v3377_v15 = vpop.f32.mrb[60].mxu1  ;;  %v5224_v17 = vadd.f32 %v3440_v5, %v1919_v21 }
 0x2fc   : > { %v3378_v53 = vpop.f32.mrb[61].mxu1 }
 0x2fd   : > { %v3379_v16 = vadd.f32 %v3378_v53, %v3377_v15  ;;  %v3380_v28 = vpop.f32.mrb[62].mxu1 }
 0x2fe   : > { %v3381_v31 = vpop.f32.mrb[63].mxu1 }
 0x2ff   : > { %v1924_v40 = vadd.f32 %v3379_v16, %v5180_v7  ;;  %v3382_v0 = vadd.f32 %v3381_v31, %v3380_v28  ;;  %v5241_v7 = vld [vmem:[%s5524_s13] ss:$0 sm:$0xff] }
 0x301   : > { %v1927_v61 = vadd.f32 %v3382_v0, %v5182_v58  ;;  %v5228_v24 = vadd.f32 %v3443_v63, %v1924_v40 }
 0x303   : > { %v3533_v33 = vpop.f32.mrb[64].mxu1  ;;  %v5235_v18 = vadd.f32 %v3446_v2, %v1927_v61 }
 0x304   : > { %v2070_v52 = vadd.f32 %v3533_v33, %v5192_v14  ;;  %v2061_v22 = vpop.f32.mrb[65].mxu1 }
 0x305   : > { %v2062_v58 = vadd.f32 %v2061_v22, %v5186_v9  ;;  %v3534_v20 = vpop.f32.mrb[66].mxu1 }
 0x306   : > { %v2133_v12 = vmul.f32 %v5233_v59, %v2070_v52  ;;  %v2073_v39 = vadd.f32 %v3534_v20, %v5194_v13  ;;  %v2064_v36 = vpop.f32.mrb[67].mxu1 }
 0x307   : > { %v2131_v43 = vmul.f32 %v5233_v59, %v2062_v58  ;;  %v2065_v60 = vadd.f32 %v2064_v36, %v5188_v3 }
 0x308   : > { %v2156_v14 = vadd.f32 %v5241_v7, %v2133_v12  ;;  %v2134_v51 = vmul.f32 %v5233_v59, %v2073_v39 }
 0x309   : > { %v2154_v44 = vadd.f32 %v5241_v7, %v2131_v43  ;;  %v2132_v35 = vmul.f32 %v5233_v59, %v2065_v60 }
 0x30a   : > { %v2157_v9 = vadd.f32 %v5241_v7, %v2134_v51  ;;  %v2172_v48 = vmax.f32 %v2156_v14, 0.0 }
 0x30b   : > { %v2155_v30 = vadd.f32 %v5241_v7, %v2132_v35  ;;  %v3537_v4 = vpop.f32.mrb[68].mxu1  ;;  %v2170_v26 = vmax.f32 %v2154_v44, 0.0 }
 0x30c   : > { %v2173_v13 = vmax.f32 %v2157_v9, 0.0  ;;  %v2086_v57 = vadd.f32 %v3537_v4, %v5204_v1  ;;  %v2077_v25 = vpop.f32.mrb[69].mxu1 }
 0x30d   : > { %v2171_v3 = vmax.f32 %v2155_v30, 0.0  ;;  %v2078_v49 = vadd.f32 %v2077_v25, %v5198_v47  ;;  %v3538_v55 = vpop.f32.mrb[70].mxu1 }
 0x30e   : > { %v2187_v38 = vpack.c.bf16 %v2173_v13, %v2172_v48  ;;  %v2137_v50 = vmul.f32 %v5233_v59, %v2086_v57  ;;  %v2089_v54 = vadd.f32 %v3538_v55, %v5206_v42  ;;  %v2080_v5 = vpop.f32.mrb[71].mxu1 }
 0x30f   : > { %v2135_v41 = vmul.f32 %v5233_v59, %v2078_v49  ;;  %v2081_v29 = vadd.f32 %v2080_v5, %v5200_v19  ;;  %v2186_v23 = vpack.c.bf16 %v2171_v3, %v2170_v26 }
 0x310   : > { %v2160_v8 = vadd.f32 %v5241_v7, %v2137_v50  ;;  %v2138_v1 = vmul.f32 %v5233_v59, %v2089_v54  ;;  %v5293_v50 = vld [vmem:[%s5525_s4] ss:$0 sm:$0xff]  ;;  %v3158_v54 = vld [vmem:[%s4416_s28 + $0x8] sm:$0xff]   ;;  %s5357_s4 = scalar_lea.hbm %s5530_s25, %s3063_s1 }
 0x311   : > { %v2158_v32 = vadd.f32 %v5241_v7, %v2135_v41  ;;  %v2136_v47 = vmul.f32 %v5233_v59, %v2081_v29  ;;  %3563 = vmatprep.mubr.bf16.mxu0 %v2186_v23 }
 0x312   : > { %v2161_v34 = vadd.f32 %v5241_v7, %v2138_v1  ;;  %3564 = vmatmul.mubr.bf16.vlgmr.msra.gmra.mrb[84].mxu0 %v2187_v38  ;;  %v2176_v27 = vmax.f32 %v2160_v8, 0.0  ;;  %v3088_v1 = vunpack.c.l.bf16 %v3158_v54 }
 0x313   : > { %v2159_v42 = vadd.f32 %v5241_v7, %v2136_v47  ;;  %v3541_v37 = vpop.f32.mrb[72].mxu1  ;;  %v2174_v45 = vmax.f32 %v2158_v32, 0.0 }
 0x314   : > { %v2177_v21 = vmax.f32 %v2161_v34, 0.0  ;;  %v2102_v19 = vadd.f32 %v3541_v37, %v5216_v56  ;;  %v2093_v63 = vpop.f32.mrb[73].mxu1 }
 0x315   : > { %v2175_v10 = vmax.f32 %v2159_v42, 0.0  ;;  %v2094_v15 = vadd.f32 %v2093_v63, %v5210_v11  ;;  %v3542_v2 = vpop.f32.mrb[74].mxu1 }
 0x316   : > { %v2189_v53 = vpack.c.bf16 %v2177_v21, %v2176_v27  ;;  %v2141_v16 = vmul.f32 %v5233_v59, %v2102_v19  ;;  %v2105_v28 = vadd.f32 %v3542_v2, %v5218_v46  ;;  %v2096_v31 = vpop.f32.mrb[75].mxu1  ;;  %v3089_v19 = vunpack.c.h.bf16 %v3158_v54  ;;  %v3161_v2 = vld [vmem:[%s4416_s28 + $0x20] sm:$0xff]  }
 0x317   : > { %v2139_v40 = vmul.f32 %v5233_v59, %v2094_v15  ;;  %v2097_v0 = vadd.f32 %v2096_v31, %v5212_v6  ;;  %v2188_v61 = vpack.c.bf16 %v2175_v10, %v2174_v45 }
 0x318   : > { %v2164_v33 = vadd.f32 %v5241_v7, %v2141_v16  ;;  %v2142_v56 = vmul.f32 %v5233_v59, %v2105_v28  ;;  %v3160_v16 = vld [vmem:[%s4416_s28 + $0x18] sm:$0xff]  }
 0x319   : > { %v2162_v52 = vadd.f32 %v5241_v7, %v2139_v40  ;;  %v2140_v11 = vmul.f32 %v5233_v59, %v2097_v0  ;;  %3567 = vmatprep.mubr.bf16.mxu1 %v2188_v61 }
 0x31a   : > { %v2165_v22 = vadd.f32 %v5241_v7, %v2142_v56  ;;  %3568 = vmatmul.mubr.bf16.vlgmr.msra.gmra.mrb[80].mxu1 %v2189_v53  ;;  %v2180_v20 = vmax.f32 %v2164_v33, 0.0  ;;  %v3100_v33 = vunpack.c.l.bf16 %v3161_v2 }
 0x31b   : > { %v2163_v46 = vadd.f32 %v5241_v7, %v2140_v11  ;;  %v3545_v58 = vpop.f32.mrb[76].mxu1  ;;  %v2178_v36 = vmax.f32 %v2162_v52, 0.0 }
 0x31c   : > { %v2181_v12 = vmax.f32 %v2165_v22, 0.0  ;;  %v2118_v6 = vadd.f32 %v3545_v58, %v5228_v24  ;;  %v2109_v39 = vpop.f32.mrb[77].mxu1 }
 0x31d   : > { %v2179_v43 = vmax.f32 %v2163_v46, 0.0  ;;  %v2110_v60 = vadd.f32 %v2109_v39, %v5222_v62  ;;  %v3546_v14 = vpop.f32.mrb[78].mxu1  ;;  %v3096_v46 = vunpack.c.l.bf16 %v3160_v16  ;;  %v3101_v39 = vunpack.c.h.bf16 %v3161_v2 }
 0x31e   : > { %v2145_v51 = vmul.f32 %v5233_v59, %v2118_v6  ;;  %v2121_v44 = vadd.f32 %v3546_v14, %v5235_v18  ;;  %v2112_v35 = vpop.f32.mrb[79].mxu1  ;;  %v2191_v9 = vpack.c.bf16 %v2181_v12, %v2180_v20 }
 0x31f   : > { %v2143_v30 = vmul.f32 %v5233_v59, %v2110_v60  ;;  %v2113_v4 = vadd.f32 %v2112_v35, %v5224_v17  ;;  %v2190_v48 = vpack.c.bf16 %v2179_v43, %v2178_v36 }
 0x320   : > { %v2168_v13 = vadd.f32 %v5241_v7, %v2145_v51  ;;  %v2146_v24 = vmul.f32 %v5233_v59, %v2121_v44  ;;  %v3097_v51 = vunpack.c.h.bf16 %v3160_v16 }
 0x321   : > { %v2166_v57 = vadd.f32 %v5241_v7, %v2143_v30  ;;  %v2144_v62 = vmul.f32 %v5233_v59, %v2113_v4  ;;  %3571 = vmatprep.mubr.bf16.mxu1 %v2190_v48  ;;  %v3159_v59 = vld [vmem:[%s4416_s28 + $0x10] sm:$0xff]  }
 0x322   : > { %v2169_v18 = vadd.f32 %v5241_v7, %v2146_v24  ;;  %3572 = vmatmul.mubr.bf16.gmra.mrb[84].mxu1 %v2191_v9  ;;  %v2184_v26 = vmax.f32 %v2168_v13, 0.0  ;;  %v3092_v29 = vunpack.c.l.bf16 %v3159_v59  ;;  %v3093_v42 = vunpack.c.h.bf16 %v3159_v59  ;;  %v3163_v4 = vld [vmem:[%s4416_s28 + $0x30] sm:$0xff]   ;;  %v3162_v13 = vld [vmem:[%s4416_s28 + $0x28] sm:$0xff]  }
 0x323   : > { %v2167_v25 = vadd.f32 %v5241_v7, %v2144_v62  ;;  %v2182_v17 = vmax.f32 %v2166_v57, 0.0  ;;  %v5300_v7 = vld [vmem:[%s5527_s5] ss:$0 sm:$0xff]  ;;  %s4087_s5 = smov [#allocation10]  }
 0x324   : > { %v2185_v3 = vmax.f32 %v2169_v18, 0.0  ;;  %s3952_s8 = sshll.u32 %s4087_s5, 4  ;;  %s3953_s8 = int_to_ptr.vmem [resolvable:$false] %s3952_s8 }
 0x325   : > { %v2183_v49 = vmax.f32 %v2167_v25, 0.0  ;;  %s3954_s16 = scalar_lea.vmem %s3953_s8, 2048  ;;  %p3955_p13 = scmp.lt.s32.totalorder %s5359_s29, %s3953_s8 }
 0x326   : > { %v2193_v55 = vpack.c.bf16 %v2185_v3, %v2184_v26  ;;  %v3108_v26 = vunpack.c.l.bf16 %v3163_v4  ;;  %p3956_p6 = scmp.lt.s32.totalorder %s3954_s16, %s3948_s20 }
 0x327   : > { %v2192_v38 = vpack.c.bf16 %v2183_v49, %v2182_v17 }
 0x328   : > { %p3957_p8 = por %p3956_p6, %p3955_p13 }
 0x329   : > { %3575 = vmatprep.mubr.bf16.mxu1 %v2192_v38  ;;  %v3104_v38 = vunpack.c.l.bf16 %v3162_v13 }
 0x32a   : > { %3576 = vmatmul.mubr.bf16.gmra.mrb[88].mxu1 %v2193_v55 }
 0x3e5   : > { %v3565_v5 = vpop.f32.mrb[84].mxu0 }
 0x3e6   : > { %v2364_v41 = vmul.f32 %v3565_v5, %v5293_v50  ;;  %v2292_v23 = vpop.f32.mrb[85].mxu0 }
 0x3e7   : > { %v2362_v8 = vmul.f32 %v5293_v50, %v2292_v23  ;;  %v3566_v32 = vpop.f32.mrb[86].mxu0 }
 0x3e8   : > { %v2387_v47 = vadd.f32 %v5300_v7, %v2364_v41  ;;  %v2365_v34 = vmul.f32 %v3566_v32, %v5293_v50  ;;  %v2295_v37 = vpop.f32.mrb[87].mxu0 }
 0x3e9   : > { %v2385_v27 = vadd.f32 %v5300_v7, %v2362_v8  ;;  %v2363_v21 = vmul.f32 %v5293_v50, %v2295_v37 }
 0x3ea   : > { %v2439_v63 = vadd.f32 %v3092_v29, %v2387_v47  ;;  %v2388_v45 = vadd.f32 %v5300_v7, %v2365_v34  ;;  %v3109_v29 = vunpack.c.h.bf16 %v3163_v4  ;;  %v3105_v47 = vunpack.c.h.bf16 %v3162_v13 }
 0x3eb   : > { %v2437_v10 = vadd.f32 %v3088_v1, %v2385_v27  ;;  %v2386_v15 = vadd.f32 %v5300_v7, %v2363_v21  ;;  %v3165_v21 = vld [vmem:[%s4416_s28 + $0x40] sm:$0xff]  }
 0x3ec   : > { %v2440_v53 = vadd.f32 %v3093_v42, %v2388_v45  ;;  %v2455_v40 = vmax.f32 %v2439_v63, 0.0  ;;  %v3164_v63 = vld [vmem:[%s4416_s28 + $0x38] sm:$0xff]   ;;  %v3116_v16 = vunpack.c.l.bf16 %v3165_v21  ;;  %s5529_s28 = sld [smem:[#allocation18_spill]] }
 0x3ed   : > { %v2438_v28 = vadd.f32 %v3089_v19, %v2386_v15  ;;  %v3569_v31 = vpop.f32.mrb[80].mxu1  ;;  %v2453_v52 = vmax.f32 %v2437_v10, 0.0 }
 0x3ee   : > { %v2456_v0 = vmax.f32 %v2440_v53, 0.0  ;;  %v2368_v61 = vmul.f32 %v3569_v31, %v5293_v50  ;;  %v2308_v56 = vpop.f32.mrb[81].mxu1 }
 0x3ef   : > { %v2454_v11 = vmax.f32 %v2438_v28, 0.0  ;;  %v2366_v22 = vmul.f32 %v5293_v50, %v2308_v56  ;;  %v3570_v58 = vpop.f32.mrb[82].mxu1 }
 0x3f0   : > { %v3126_v20 = vpack.c.bf16 %v2456_v0, %v2455_v40  ;;  %v2391_v12 = vadd.f32 %v5300_v7, %v2368_v61  ;;  %v2369_v6 = vmul.f32 %v3570_v58, %v5293_v50  ;;  %v2311_v36 = vpop.f32.mrb[83].mxu1  ;;  %v3112_v61 = vunpack.c.l.bf16 %v3164_v63 }
 0x3f1   : > { %v3121_v43 = vpack.c.bf16 %v2454_v11, %v2453_v52  ;;  %v2389_v60 = vadd.f32 %v5300_v7, %v2366_v22  ;;  %v2367_v14 = vmul.f32 %v5293_v50, %v2311_v36  ;;  %v3117_v22 = vunpack.c.h.bf16 %v3165_v21 }
 0x3f2   : > { %3166 = vst [vmem:[%s5321_s30 + $0x8] sm:$0xff] %v3126_v20   ;;  %v2443_v44 = vadd.f32 %v3100_v33, %v2391_v12  ;;  %v2392_v35 = vadd.f32 %v5300_v7, %v2369_v6  ;;  %v3113_v6 = vunpack.c.h.bf16 %v3164_v63  ;;  %p5531_p2 = scmp.ne.s32.totalorder %s5529_s28, 0 }
 0x3f3   : > { %3122 = vst [vmem:[%s5321_s30] sm:$0xff] %v3121_v43   ;;  %v2441_v9 = vadd.f32 %v3096_v46, %v2389_v60  ;;  %v2390_v30 = vadd.f32 %v5300_v7, %v2367_v14 }
 0x3f4   : > { %v2444_v48 = vadd.f32 %v3101_v39, %v2392_v35  ;;  %v2459_v62 = vmax.f32 %v2443_v44, 0.0  ;;  %p3950_p9 = pnand %p3949_p10, %p5531_p2 }
 0x3f5   : > { %v2442_v24 = vadd.f32 %v3097_v51, %v2390_v30  ;;  %v3573_v57 = vpop.f32.mrb[84].mxu1  ;;  %v2457_v17 = vmax.f32 %v2441_v9, 0.0 }
 0x3f6   : > { %v2460_v18 = vmax.f32 %v2444_v48, 0.0  ;;  %v2372_v25 = vmul.f32 %v3573_v57, %v5293_v50  ;;  %v2324_v3 = vpop.f32.mrb[85].mxu1  ;;  %p3951_p5 = pneg %p3950_p9 }
 0x3f7   : > { %v2458_v49 = vmax.f32 %v2442_v24, 0.0  ;;  %v2370_v55 = vmul.f32 %v5293_v50, %v2324_v3  ;;  %v3574_v59 = vpop.f32.mrb[86].mxu1 }
 0x3f8   : > { %v3136_v54 = vpack.c.bf16 %v2460_v18, %v2459_v62  ;;  %v2395_v5 = vadd.f32 %v5300_v7, %v2372_v25  ;;  %v2373_v41 = vmul.f32 %v3574_v59, %v5293_v50  ;;  %v2327_v23 = vpop.f32.mrb[87].mxu1  ;;  %p3958_p12 = pnand %p3957_p8, %p3951_p5 }
 0x3f9   : > { %v3131_v8 = vpack.c.bf16 %v2458_v49, %v2457_v17  ;;  %v2393_v1 = vadd.f32 %v5300_v7, %v2370_v55  ;;  %v2371_v32 = vmul.f32 %v5293_v50, %v2327_v23 }
 0x3fa   : > { %3168 = vst [vmem:[%s5321_s30 + $0x18] sm:$0xff] %v3136_v54   ;;  %v2447_v34 = vadd.f32 %v3108_v26, %v2395_v5  ;;  %v2396_v42 = vadd.f32 %v5300_v7, %v2373_v41 }
 0x3fb   : > { %3167 = vst [vmem:[%s5321_s30 + $0x10] sm:$0xff] %v3131_v8   ;;  %v2445_v37 = vadd.f32 %v3104_v38, %v2393_v1  ;;  %v2394_v27 = vadd.f32 %v5300_v7, %v2371_v32 }
 0x3fc   : > { %v2448_v19 = vadd.f32 %v3109_v29, %v2396_v42  ;;  %v2463_v15 = vmax.f32 %v2447_v34, 0.0 }
 0x3fd   : > { %v2446_v45 = vadd.f32 %v3105_v47, %v2394_v27  ;;  %v3577_v10 = vpop.f32.mrb[88].mxu1  ;;  %v2461_v31 = vmax.f32 %v2445_v37, 0.0 }
 0x3fe   : > { %v2464_v2 = vmax.f32 %v2448_v19, 0.0  ;;  %v2376_v53 = vmul.f32 %v3577_v10, %v5293_v50  ;;  %v2340_v28 = vpop.f32.mrb[89].mxu1 }
 0x3ff   : > { %v2462_v40 = vmax.f32 %v2446_v45, 0.0  ;;  %v2374_v0 = vmul.f32 %v5293_v50, %v2340_v28  ;;  %v3578_v33 = vpop.f32.mrb[90].mxu1 }
 0x400   : > { %v3146_v56 = vpack.c.bf16 %v2464_v2, %v2463_v15  ;;  %v2399_v52 = vadd.f32 %v5300_v7, %v2376_v53  ;;  %v2377_v11 = vmul.f32 %v3578_v33, %v5293_v50  ;;  %v2343_v46 = vpop.f32.mrb[91].mxu1 }
 0x401   : > { %v3141_v58 = vpack.c.bf16 %v2462_v40, %v2461_v31  ;;  %v2397_v20 = vadd.f32 %v5300_v7, %v2374_v0  ;;  %v2375_v12 = vmul.f32 %v5293_v50, %v2343_v46 }
 0x402   : > { %3170 = vst [vmem:[%s5321_s30 + $0x28] sm:$0xff] %v3146_v56   ;;  %v2451_v39 = vadd.f32 %v3116_v16, %v2399_v52  ;;  %v2400_v36 = vadd.f32 %v5300_v7, %v2377_v11 }
 0x403   : > { %3169 = vst [vmem:[%s5321_s30 + $0x20] sm:$0xff] %v3141_v58   ;;  %v2449_v43 = vadd.f32 %v3112_v61, %v2397_v20  ;;  %v2398_v60 = vadd.f32 %v5300_v7, %v2375_v12 }
 0x404   : > { %v2452_v14 = vadd.f32 %v3117_v22, %v2400_v36  ;;  %v2467_v44 = vmax.f32 %v2451_v39, 0.0 }
 0x405   : > { %v2450_v51 = vadd.f32 %v3113_v6, %v2398_v60  ;;  %v2465_v35 = vmax.f32 %v2449_v43, 0.0 }
 0x406   : > { %v2468_v50 = vmax.f32 %v2452_v14, 0.0 }
 0x407   : > { %v2466_v9 = vmax.f32 %v2450_v51, 0.0 }
 0x408   : > { %v3156_v30 = vpack.c.bf16 %v2468_v50, %v2467_v44 }
 0x409   : > { %v3151_v7 = vpack.c.bf16 %v2466_v9, %v2465_v35 }
 0x40a   : > { %3172 = vst [vmem:[%s5321_s30 + $0x38] sm:$0xff] %v3156_v30  }
 0x40b   : > { %3171 = vst [vmem:[%s5321_s30 + $0x30] sm:$0xff] %v3151_v7  }
 0x40c   : > { %3961 = shalt.err (!%p3958_p12)
}
 0x40d   : > { %s3962_s26 = scalar_lea.hbm %s5357_s4, 1024  ;;  %s3966_s3 = scalar_lea.hbm %s5530_s25, 4096 }
 0x40e   : > { %p3963_p4 = scmp.ne.s32.totalorder %s5357_s4, %s3962_s26  ;;  %p3967_p0 = scmp.lt.u32.totalorder %s5357_s4, %s5530_s25 }
 0x40f   : > { %p3968_p1 = scmp.lt.u32.totalorder %s3966_s3, %s3962_s26  ;;  %p3970_p10 = scmp.lt.u32.totalorder %s3962_s26, %s5357_s4 }
 0x410   : > { %p3964_p7 = pnand %p3963_p4, %p5531_p2 }
 0x411   : > { %p3969_p11 = por %p3968_p1, %p3967_p0 }
 0x412   : > { %p3965_p3 = pneg %p3964_p7 }
 0x413   : > { %p3971_p9 = por %p3970_p10, %p3969_p11 }
 0x415   : > { %p3972_p5 = pnand %p3971_p9, %p3965_p3 }
 0x417   : > { %3975 = shalt.err (!%p3972_p5)
}
 0x418   : > { %s4088_s1 = smov 64   ;;  %s4089_s13 = smov 4  }
 0x419   : > { %3612 = dma.vmem_to_hbm [thread:$0]  (%p5531_p2), %s5359_s29, 1024, %s5357_s4, %s5365_s11, %s4088_s1, %s4088_s1, %s4089_s13  }
 0x41a PF: > { %s5532_s12 = sld [smem:[#allocation15_spill]]  ;;  %s5533_s20 = sld [smem:[#allocation19_spill]] }
 0x41b   : > { %p3639_p13 = scmp.ge.s32.totalorder %s4078_s23, 2 }
 0x420   : > { %s2581_s5 = sand.u32 1, %s5532_s12   ;;  %p5534_p6 = scmp.ne.s32.totalorder %s5533_s20, 0 }
 0x421   : > { %s2582_s8 = scalar_lea.sflag [#allocation4], %s2581_s5 }
 0x422   : > { %p3629_p8 = pnand %p3639_p13, %p5534_p6 }
 0x424   : > { %4033 = dma.done.wait (!%p3629_p8), %s2582_s8, 1024  }
 0x425   : > { %4035 = vsyncadd (!%p3629_p8), %s2582_s8, 4294966272  ;;  %s28_s23 = sadd.s32 1, %s4078_s23   ;;  %s5535_s13 = sld [smem:[#allocation16_spill]] }
 0x426   : > { %p25_p12 = scmp.ge.s32.totalorder %s28_s23, 6   ;;  %s5536_s28 = smov %s5547_s14 }
 0x427   : > { %s5537_s14 = smov %s4046_s15  ;;  %s5538_s15 = smov %s4352_s27 }
 0x428   : > { %s5539_s16 = smov %s4054_s17  ;;  %s5540_s17 = smov %s4058_s18 }
 0x429   : > { %s5541_s18 = smov %s4347_s9  ;;  %s5542_s19 = smov %s4070_s21 }
 0x42a   : > { %s5543_s20 = smov %s4074_s22  ;;  %s5544_s21 = smov %s5536_s28 }
 0x42b   : > { %s5545_s22 = smov %s5551_s24  ;;  %27 = sbr.rel (!%p25_p12) target bundleno = 20 (0x14), region = 119 }
 0x432   :  { %2587 = vsyncpa [#allocation3], 1 }
 0x433   :  { %2589 = vsyncpa [#allocation3 + $0x1], 1 }
 0x434   :  { %2590 = vsyncpa [#allocation6], 1 }
 0x435   :  { %2591 = vsyncpa [#allocation9], 1 }
 0x436   :  { %2592 = vsyncpa [#allocation4], 1 }
 0x437   :  { %2594 = vsyncpa [#allocation4 + $0x1], 1 }

</bundles_post_ra>
